<compile_context>
chip_gen: v6e
topology: v6e:2x2x1
jax: 0.10.0
libtpu: 0.0.40
codegen_flags: <defaults>
</compile_context>

<pallas_src>
import math

import jax
import jax.numpy as jnp
from jax import lax
from jax.experimental import pallas as pl
from jax.experimental.pallas import tpu as pltpu


def _round_up(x, m):
    return (x + m - 1) // m * m


# ------------------------- in-kernel helper functions -------------------------
def _edge_masks(L, H, W):
    """(1, L) boolean masks: does the +/-1 neighbour along h / w stay inside the image?

    Flat lane index is b*H*W + h*W + w.  W and H*W are powers of two, so the index
    math is pure bit ops (no vector integer div/mod).
    """
    pos = lax.broadcasted_iota(jnp.int32, (1, L), 1)
    w_idx = jnp.bitwise_and(pos, W - 1)
    h_idx = jnp.right_shift(jnp.bitwise_and(pos, H * W - 1), int(math.log2(W)))
    row = {-1: h_idx >= 1, 1: h_idx <= H - 2}
    col = {-1: w_idx >= 1, 1: w_idx <= W - 2}
    return row, col


def _conv3x3(pad_ref, base, L, w_img, row_ok, col_ok, cin, w_mat, bias):
    """3x3 / stride-1 / pad-1 conv in the (C, flat-spatial) layout.

    The (already ReLU'd, if needed) input is resident in pad_ref[:cin, base:base+L].
    The 9 taps are static-offset slices of the scratch; image-boundary positions are
    zeroed with iota masks (== zero padding).  Taps are stacked into a (9*cin, L)
    im2col block and contracted in a single MXU matmul with the bias folded in.
    """
    taps = []
    for oy in (-1, 0, 1):
        for ox in (-1, 0, 1):
            off = oy * w_img + ox
            t = pad_ref[0:cin, base + off:base + off + L]
            m = None
            if oy != 0:
                m = row_ok[oy]
            if ox != 0:
                m = col_ok[ox] if m is None else jnp.logical_and(m, col_ok[ox])
            taps.append(t if m is None else jnp.where(m, t, 0.0))
    patches = jnp.concatenate(taps, axis=0)                       # (9*cin, L)
    return jnp.dot(w_mat, patches, preferred_element_type=jnp.float32) + bias


# -------------------------------- module glue ---------------------------------
def impala_block(x_nchw, params):
    B, Cin, H, W = x_nchw.shape
    Cout = params["conv_b"].shape[0]
    assert H % 2 == 0 and W % 2 == 0
    assert (H & (H - 1)) == 0 and (W & (W - 1)) == 0, "pow2 H/W (bit-op index math)"
    Ho, Wo = H // 2, W // 2
    cin_p = _round_up(Cin, 8)          # pad channels to 8 so tap stacking is aligned
    c_p = _round_up(Cout, 8)

    # Images per grid step: amortize the ~0.35us/step overhead, but keep >= 2 grid
    # steps so v7x can still shard the batch axis over its two TensorCores.
    block_b = 1
    for cand in (4, 2):
        if B % cand == 0 and B // cand >= 2:
            block_b = cand
            break
    nb = B // block_b
    L1 = block_b * H * W
    L2 = block_b * Ho * Wo
    base1 = _round_up(W + 1, 128)      # lane-aligned interior offsets in the scratches
    base2 = _round_up(Wo + 1, 128)
    c1 = max(cin_p, c_p)

    # ---- wrapper-side layout plumbing (channels -> sublanes, flat spatial -> lanes) ----
    x = x_nchw.astype(jnp.float32)
    if cin_p != Cin:                   # one-time channel pad of the tiny input (layout only)
        x = jnp.pad(x, ((0, 0), (0, cin_p - Cin), (0, 0), (0, 0)))
    x = (x.reshape(nb, block_b, cin_p, H * W)
          .transpose(0, 2, 1, 3)
          .reshape(nb, cin_p, L1))

    def prep_w(w, ci, ci_p):
        w = jnp.pad(w.astype(jnp.float32),
                    ((0, 0), (0, 0), (0, ci_p - ci), (0, c_p - Cout)))
        return w.reshape(9 * ci_p, c_p).T              # (Cout_p, 9*Cin_p), tap-major K

    def prep_b(b):
        return jnp.pad(b.astype(jnp.float32), (0, c_p - Cout))

    w0 = prep_w(params["conv_w"], Cin, cin_p)
    wr = jnp.stack([prep_w(params["res1"]["w1"], Cout, c_p),
                    prep_w(params["res1"]["w2"], Cout, c_p),
                    prep_w(params["res2"]["w1"], Cout, c_p),
                    prep_w(params["res2"]["w2"], Cout, c_p)], axis=0)     # (4, C, 9C)
    b_all = jnp.stack([prep_b(params["conv_b"]),
                       prep_b(params["res1"]["b1"]), prep_b(params["res1"]["b2"]),
                       prep_b(params["res2"]["b1"]), prep_b(params["res2"]["b2"])],
                      axis=0)[:, :, None]                                  # (5, C, 1)

    # 0/1 selection matrix for the stride-2 pool subsample (pooled = dense_max @ S on
    # the MXU): one column per output pixel, picking the window-centre column (2ho,2wo).
    q = jnp.arange(L2, dtype=jnp.int32)
    src = 4 * q - 2 * (q % Wo)
    sel = (jnp.arange(L1, dtype=jnp.int32)[:, None] == src[None, :]).astype(jnp.float32)

    # --------------------------- fused ImpalaBlock kernel -------------------------
    def kernel(x_ref, w0_ref, wr_ref, b_ref, sel_ref, o_ref, pad1, pad2):
        row1, col1 = _edge_masks(L1, H, W)     # full-resolution boundary masks
        row2, col2 = _edge_masks(L2, Ho, Wo)   # pooled-resolution boundary masks

        # ---- stage 1: conv3x3 at full resolution (no input relu) ----
        pad1[0:cin_p, base1:base1 + L1] = x_ref[0]
        y = _conv3x3(pad1, base1, L1, W, row1, col1, cin_p, w0_ref[...], b_ref[0])

        # ---- stage 2: maxpool 3x3 / stride 2 / pad 1 (separable, -inf boundaries) ----
        pad1[0:c_p, base1:base1 + L1] = y
        above = pad1[0:c_p, base1 - W:base1 - W + L1]          # y(h-1, w)
        below = pad1[0:c_p, base1 + W:base1 + W + L1]          # y(h+1, w)
        rm = jnp.maximum(y, jnp.maximum(jnp.where(row1[-1], above, -jnp.inf),
                                        jnp.where(row1[1], below, -jnp.inf)))
        pad1[0:c_p, base1:base1 + L1] = rm
        left = pad1[0:c_p, base1 - 1:base1 - 1 + L1]
        right = pad1[0:c_p, base1 + 1:base1 + 1 + L1]
        cm = jnp.maximum(rm, jnp.maximum(jnp.where(col1[-1], left, -jnp.inf),
                                         jnp.where(col1[1], right, -jnp.inf)))
        # Stride-2 subsample as a split-precision selection matmul: the hi part is
        # exactly bf16-representable so the pick stays exact whichever f32 MXU path
        # Mosaic uses; the lo part only carries ~2^-8 of the magnitude.
        s = sel_ref[...]
        cm_hi = cm.astype(jnp.bfloat16).astype(jnp.float32)
        cm_lo = cm - cm_hi
        pooled = (jnp.dot(cm_hi, s, preferred_element_type=jnp.float32)
                  + jnp.dot(cm_lo, s, preferred_element_type=jnp.float32))   # (C, L2)

        # ---- stages 3/4: two residual blocks at pooled resolution ----
        def res_block(xin, w1, b1, w2, b2):
            pad2[0:c_p, base2:base2 + L2] = jnp.maximum(xin, 0.0)
            h = _conv3x3(pad2, base2, L2, Wo, row2, col2, c_p, w1, b1)
            pad2[0:c_p, base2:base2 + L2] = jnp.maximum(h, 0.0)
            h = _conv3x3(pad2, base2, L2, Wo, row2, col2, c_p, w2, b2)
            return xin + h

        out = res_block(pooled, wr_ref[0], b_ref[1], wr_ref[1], b_ref[2])
        out = res_block(out, wr_ref[2], b_ref[3], wr_ref[3], b_ref[4])
        o_ref[0] = out                                          # (C, block_b*Ho*Wo)

    grid_spec = pltpu.PrefetchScalarGridSpec(
        num_scalar_prefetch=0,
        grid=(nb,),
        in_specs=[
            pl.BlockSpec((1, cin_p, L1), lambda bb: (bb, 0, 0)),
            pl.BlockSpec((c_p, 9 * cin_p), lambda bb: (0, 0)),
            pl.BlockSpec((4, c_p, 9 * c_p), lambda bb: (0, 0, 0)),
            pl.BlockSpec((5, c_p, 1), lambda bb: (0, 0, 0)),
            pl.BlockSpec((L1, L2), lambda bb: (0, 0)),
        ],
        out_specs=pl.BlockSpec((1, c_p, L2), lambda bb: (bb, 0, 0)),
        scratch_shapes=[
            pltpu.VMEM((c1, base1 + L1 + W + 1), jnp.float32),    # full-res pad scratch
            pltpu.VMEM((c_p, base2 + L2 + Wo + 1), jnp.float32),  # pooled-res pad scratch
        ],
    )

    out = pl.pallas_call(
        kernel,
        out_shape=jax.ShapeDtypeStruct((nb, c_p, L2), jnp.float32),
        grid_spec=grid_spec,
        compiler_params=pltpu.CompilerParams(
            dimension_semantics=("parallel",)),    # batch axis over both v7x TCs
    )(x, w0, wr, b_all, sel)

    # Kernel-native layout is already channel-major -> NCHW falls out of a reshape.
    out = (out.reshape(nb, c_p, block_b, Ho, Wo)
              .transpose(0, 2, 1, 3, 4)
              .reshape(B, c_p, Ho, Wo))
    return out[:, :Cout]


def init_impala_params(key, in_channels, out_channels):
    def conv_params(k, cin, cout):
        kw, kb = jax.random.split(k)
        w = 0.1 * jax.random.normal(kw, (3, 3, cin, cout), jnp.float32)
        b = 0.1 * jax.random.normal(kb, (cout,), jnp.float32)
        return w, b

    ks = jax.random.split(key, 5)
    p = {}
    p["conv_w"], p["conv_b"] = conv_params(ks[0], in_channels, out_channels)
    for name, k1, k2 in (("res1", ks[1], ks[2]), ("res2", ks[3], ks[4])):
        w1, b1 = conv_params(k1, out_channels, out_channels)
        w2, b2 = conv_params(k2, out_channels, out_channels)
        p[name] = dict(w1=w1, b1=b1, w2=w2, b2=b2)
    return p


# ----------------------------- pure-JAX reference -----------------------------
def _ref_conv(x, w, b):  # NHWC, HWIO
    y = lax.conv_general_dilated(x, w, window_strides=(1, 1),
                                 padding=((1, 1), (1, 1)),
                                 dimension_numbers=("NHWC", "HWIO", "NHWC"))
    return y + b


def _ref_impala(x_nchw, p):
    x = jnp.transpose(x_nchw, (0, 2, 3, 1))
    x = _ref_conv(x, p["conv_w"], p["conv_b"])
    x = lax.reduce_window(x, -jnp.inf, lax.max, (1, 3, 3, 1), (1, 2, 2, 1),
                          ((0, 0), (1, 1), (1, 1), (0, 0)))
    for name in ("res1", "res2"):
        q = p[name]
        h = _ref_conv(jax.nn.relu(x), q["w1"], q["b1"])
        x = _ref_conv(jax.nn.relu(h), q["w2"], q["b2"]) + x
    return jnp.transpose(x, (0, 3, 1, 2))


# ------------------------------------ main -------------------------------------
if __name__ == "__main__":
    key = jax.random.PRNGKey(0)
    kx, kp = jax.random.split(key)

    B, Cin, Cout, H, W = 2, 4, 8, 16, 16
    x = jax.random.normal(kx, (B, Cin, H, W), jnp.float32)   # PyTorch-style NCHW
    params = init_impala_params(kp, Cin, Cout)

    out = jax.block_until_ready(impala_block(x, params))
    ref = jax.block_until_ready(_ref_impala(x, params))

    assert out.shape == (B, Cout, H // 2, W // 2), out.shape
    assert jnp.allclose(out, ref, atol=1e-4, rtol=1e-4), \
        float(jnp.max(jnp.abs(out - ref)))
    print("KERNEL_OK")
</pallas_src>

<mosaic_0001>
module attributes {stable_mosaic.version = 11 : i64} {
  func.func @kernel(%arg0: i32, %arg1: memref<1x8x256xf32, #tpu.memory_space<vmem>>, %arg2: memref<8x72xf32, #tpu.memory_space<vmem>>, %arg3: memref<4x8x72xf32, #tpu.memory_space<vmem>>, %arg4: memref<5x8x1xf32, #tpu.memory_space<vmem>>, %arg5: memref<256x64xf32, #tpu.memory_space<vmem>>, %arg6: memref<1x8x64xf32, #tpu.memory_space<vmem>>, %arg7: memref<8x401xf32, #tpu.memory_space<vmem>>, %arg8: memref<8x201xf32, #tpu.memory_space<vmem>>) attributes {dimension_semantics = [#tpu.dimension_semantics<parallel>], iteration_bounds = array<i64: 2>, scalar_prefetch = 0 : i64, scratch_operands = 2 : i64, tpu.core_type = #tpu.core_type<tc>, window_params = [{transform_indices = @transform_0, window_bounds = array<i64: 1, 8, 256>}, {pipeline_mode = #tpu.pipeline_mode<synchronous>, transform_indices = @transform_1, window_bounds = array<i64: 8, 72>}, {pipeline_mode = #tpu.pipeline_mode<synchronous>, transform_indices = @transform_2, window_bounds = array<i64: 4, 8, 72>}, {pipeline_mode = #tpu.pipeline_mode<synchronous>, transform_indices = @transform_3, window_bounds = array<i64: 5, 8, 1>}, {pipeline_mode = #tpu.pipeline_mode<synchronous>, transform_indices = @transform_4, window_bounds = array<i64: 256, 64>}, {transform_indices = @transform_5, window_bounds = array<i64: 1, 8, 64>}]} {
    %0 = tpu.iota {dimensions = array<i32: 1>} : vector<1x256xi32>
    %c15_i32 = arith.constant 15 : i32
    %1 = vector.broadcast %c15_i32 : i32 to vector<1x256xi32>
    %2 = arith.andi %0, %1 : vector<1x256xi32>
    %c255_i32 = arith.constant 255 : i32
    %3 = vector.broadcast %c255_i32 : i32 to vector<1x256xi32>
    %4 = arith.andi %0, %3 : vector<1x256xi32>
    %c4_i32 = arith.constant 4 : i32
    %5 = vector.broadcast %c4_i32 : i32 to vector<1x256xi32>
    %6 = arith.shrsi %4, %5 : vector<1x256xi32>
    %c1_i32 = arith.constant 1 : i32
    %7 = vector.broadcast %c1_i32 : i32 to vector<1x256xi32>
    %8 = arith.cmpi sge, %6, %7 : vector<1x256xi32>
    %c14_i32 = arith.constant 14 : i32
    %9 = vector.broadcast %c14_i32 : i32 to vector<1x256xi32>
    %10 = arith.cmpi sle, %6, %9 : vector<1x256xi32>
    %c1_i32_0 = arith.constant 1 : i32
    %11 = vector.broadcast %c1_i32_0 : i32 to vector<1x256xi32>
    %12 = arith.cmpi sge, %2, %11 : vector<1x256xi32>
    %c14_i32_1 = arith.constant 14 : i32
    %13 = vector.broadcast %c14_i32_1 : i32 to vector<1x256xi32>
    %14 = arith.cmpi sle, %2, %13 : vector<1x256xi32>
    %15 = tpu.iota {dimensions = array<i32: 1>} : vector<1x64xi32>
    %c7_i32 = arith.constant 7 : i32
    %16 = vector.broadcast %c7_i32 : i32 to vector<1x64xi32>
    %17 = arith.andi %15, %16 : vector<1x64xi32>
    %c63_i32 = arith.constant 63 : i32
    %18 = vector.broadcast %c63_i32 : i32 to vector<1x64xi32>
    %19 = arith.andi %15, %18 : vector<1x64xi32>
    %c3_i32 = arith.constant 3 : i32
    %20 = vector.broadcast %c3_i32 : i32 to vector<1x64xi32>
    %21 = arith.shrsi %19, %20 : vector<1x64xi32>
    %c1_i32_2 = arith.constant 1 : i32
    %22 = vector.broadcast %c1_i32_2 : i32 to vector<1x64xi32>
    %23 = arith.cmpi sge, %21, %22 : vector<1x64xi32>
    %c6_i32 = arith.constant 6 : i32
    %24 = vector.broadcast %c6_i32 : i32 to vector<1x64xi32>
    %25 = arith.cmpi sle, %21, %24 : vector<1x64xi32>
    %c1_i32_3 = arith.constant 1 : i32
    %26 = vector.broadcast %c1_i32_3 : i32 to vector<1x64xi32>
    %27 = arith.cmpi sge, %17, %26 : vector<1x64xi32>
    %c6_i32_4 = arith.constant 6 : i32
    %28 = vector.broadcast %c6_i32_4 : i32 to vector<1x64xi32>
    %29 = arith.cmpi sle, %17, %28 : vector<1x64xi32>
    %c0 = arith.constant 0 : index
    %c0_5 = arith.constant 0 : index
    %c0_6 = arith.constant 0 : index
    %30 = vector.load %arg1[%c0, %c0_5, %c0_6] : memref<1x8x256xf32, #tpu.memory_space<vmem>>, vector<1x8x256xf32>
    %31 = vector.shape_cast %30 : vector<1x8x256xf32> to vector<8x256xf32>
    %c0_7 = arith.constant 0 : index
    %c128 = arith.constant 128 : index
    %32 = vector.load %arg7[%c0_7, %c128] : memref<8x401xf32, #tpu.memory_space<vmem>>, vector<8x256xf32>
    tpu.vector_store %arg7[%c0_7, %c128], %31 {strides = array<i32>} : memref<8x401xf32, #tpu.memory_space<vmem>>, vector<8x256xf32>,
    %c0_8 = arith.constant 0 : index
    %c0_9 = arith.constant 0 : index
    %33 = vector.load %arg2[%c0_8, %c0_9] : memref<8x72xf32, #tpu.memory_space<vmem>>, vector<8x72xf32>
    %c0_10 = arith.constant 0 : index
    %c0_11 = arith.constant 0 : index
    %c0_12 = arith.constant 0 : index
    %34 = vector.load %arg4[%c0_10, %c0_11, %c0_12] : memref<5x8x1xf32, #tpu.memory_space<vmem>>, vector<1x8x1xf32>
    %35 = vector.shape_cast %34 : vector<1x8x1xf32> to vector<8x1xf32>
    %c0_13 = arith.constant 0 : index
    %c111 = arith.constant 111 : index
    %36 = vector.load %arg7[%c0_13, %c111] : memref<8x401xf32, #tpu.memory_space<vmem>>, vector<8x256xf32>
    %37 = arith.andi %8, %12 : vector<1x256xi1>
    %cst = arith.constant 0.000000e+00 : f32
    %38 = vector.shape_cast %37 : vector<1x256xi1> to vector<1x256xi1>
    %39 = vector.broadcast %38 : vector<1x256xi1> to vector<8x256xi1>
    %40 = vector.broadcast %cst : f32 to vector<8x256xf32>
    %41 = arith.select %39, %36, %40 : vector<8x256xi1>, vector<8x256xf32>
    %c0_14 = arith.constant 0 : index
    %c112 = arith.constant 112 : index
    %42 = vector.load %arg7[%c0_14, %c112] : memref<8x401xf32, #tpu.memory_space<vmem>>, vector<8x256xf32>
    %cst_15 = arith.constant 0.000000e+00 : f32
    %43 = vector.shape_cast %8 : vector<1x256xi1> to vector<1x256xi1>
    %44 = vector.broadcast %43 : vector<1x256xi1> to vector<8x256xi1>
    %45 = vector.broadcast %cst_15 : f32 to vector<8x256xf32>
    %46 = arith.select %44, %42, %45 : vector<8x256xi1>, vector<8x256xf32>
    %c0_16 = arith.constant 0 : index
    %c113 = arith.constant 113 : index
    %47 = vector.load %arg7[%c0_16, %c113] : memref<8x401xf32, #tpu.memory_space<vmem>>, vector<8x256xf32>
    %48 = arith.andi %8, %14 : vector<1x256xi1>
    %cst_17 = arith.constant 0.000000e+00 : f32
    %49 = vector.shape_cast %48 : vector<1x256xi1> to vector<1x256xi1>
    %50 = vector.broadcast %49 : vector<1x256xi1> to vector<8x256xi1>
    %51 = vector.broadcast %cst_17 : f32 to vector<8x256xf32>
    %52 = arith.select %50, %47, %51 : vector<8x256xi1>, vector<8x256xf32>
    %c0_18 = arith.constant 0 : index
    %c127 = arith.constant 127 : index
    %53 = vector.load %arg7[%c0_18, %c127] : memref<8x401xf32, #tpu.memory_space<vmem>>, vector<8x256xf32>
    %cst_19 = arith.constant 0.000000e+00 : f32
    %54 = vector.shape_cast %12 : vector<1x256xi1> to vector<1x256xi1>
    %55 = vector.broadcast %54 : vector<1x256xi1> to vector<8x256xi1>
    %56 = vector.broadcast %cst_19 : f32 to vector<8x256xf32>
    %57 = arith.select %55, %53, %56 : vector<8x256xi1>, vector<8x256xf32>
    %c0_20 = arith.constant 0 : index
    %c128_21 = arith.constant 128 : index
    %58 = vector.load %arg7[%c0_20, %c128_21] : memref<8x401xf32, #tpu.memory_space<vmem>>, vector<8x256xf32>
    %c0_22 = arith.constant 0 : index
    %c129 = arith.constant 129 : index
    %59 = vector.load %arg7[%c0_22, %c129] : memref<8x401xf32, #tpu.memory_space<vmem>>, vector<8x256xf32>
    %cst_23 = arith.constant 0.000000e+00 : f32
    %60 = vector.shape_cast %14 : vector<1x256xi1> to vector<1x256xi1>
    %61 = vector.broadcast %60 : vector<1x256xi1> to vector<8x256xi1>
    %62 = vector.broadcast %cst_23 : f32 to vector<8x256xf32>
    %63 = arith.select %61, %59, %62 : vector<8x256xi1>, vector<8x256xf32>
    %c0_24 = arith.constant 0 : index
    %c143 = arith.constant 143 : index
    %64 = vector.load %arg7[%c0_24, %c143] : memref<8x401xf32, #tpu.memory_space<vmem>>, vector<8x256xf32>
    %65 = arith.andi %10, %12 : vector<1x256xi1>
    %cst_25 = arith.constant 0.000000e+00 : f32
    %66 = vector.shape_cast %65 : vector<1x256xi1> to vector<1x256xi1>
    %67 = vector.broadcast %66 : vector<1x256xi1> to vector<8x256xi1>
    %68 = vector.broadcast %cst_25 : f32 to vector<8x256xf32>
    %69 = arith.select %67, %64, %68 : vector<8x256xi1>, vector<8x256xf32>
    %c0_26 = arith.constant 0 : index
    %c144 = arith.constant 144 : index
    %70 = vector.load %arg7[%c0_26, %c144] : memref<8x401xf32, #tpu.memory_space<vmem>>, vector<8x256xf32>
    %cst_27 = arith.constant 0.000000e+00 : f32
    %71 = vector.shape_cast %10 : vector<1x256xi1> to vector<1x256xi1>
    %72 = vector.broadcast %71 : vector<1x256xi1> to vector<8x256xi1>
    %73 = vector.broadcast %cst_27 : f32 to vector<8x256xf32>
    %74 = arith.select %72, %70, %73 : vector<8x256xi1>, vector<8x256xf32>
    %c0_28 = arith.constant 0 : index
    %c145 = arith.constant 145 : index
    %75 = vector.load %arg7[%c0_28, %c145] : memref<8x401xf32, #tpu.memory_space<vmem>>, vector<8x256xf32>
    %76 = arith.andi %10, %14 : vector<1x256xi1>
    %cst_29 = arith.constant 0.000000e+00 : f32
    %77 = vector.shape_cast %76 : vector<1x256xi1> to vector<1x256xi1>
    %78 = vector.broadcast %77 : vector<1x256xi1> to vector<8x256xi1>
    %79 = vector.broadcast %cst_29 : f32 to vector<8x256xf32>
    %80 = arith.select %78, %75, %79 : vector<8x256xi1>, vector<8x256xf32>
    %81 = tpu.concatenate %41, %46, %52, %57, %58, %63, %69, %74, %80 in 0 : vector<8x256xf32>, vector<8x256xf32>, vector<8x256xf32>, vector<8x256xf32>, vector<8x256xf32>, vector<8x256xf32>, vector<8x256xf32>, vector<8x256xf32>, vector<8x256xf32> -> vector<72x256xf32>
    %cst_30 = arith.constant dense<0.000000e+00> : vector<8x256xf32>
    %82 = tpu.matmul %33, %81, %cst_30 {dimension_numbers = #tpu.dot_dimension_numbers<[1], [0], [0], [1], [0, 0, 1, 1], [], []>} : vector<8x72xf32>, vector<72x256xf32>, vector<8x256xf32> -> vector<8x256xf32>
    %83 = vector.broadcast %35 : vector<8x1xf32> to vector<8x256xf32>
    %84 = arith.addf %82, %83 : vector<8x256xf32>
    %c0_31 = arith.constant 0 : index
    %c128_32 = arith.constant 128 : index
    %85 = vector.load %arg7[%c0_31, %c128_32] : memref<8x401xf32, #tpu.memory_space<vmem>>, vector<8x256xf32>
    tpu.vector_store %arg7[%c0_31, %c128_32], %84 {strides = array<i32>} : memref<8x401xf32, #tpu.memory_space<vmem>>, vector<8x256xf32>,
    %c0_33 = arith.constant 0 : index
    %c112_34 = arith.constant 112 : index
    %86 = vector.load %arg7[%c0_33, %c112_34] : memref<8x401xf32, #tpu.memory_space<vmem>>, vector<8x256xf32>
    %c0_35 = arith.constant 0 : index
    %c144_36 = arith.constant 144 : index
    %87 = vector.load %arg7[%c0_35, %c144_36] : memref<8x401xf32, #tpu.memory_space<vmem>>, vector<8x256xf32>
    %cst_37 = arith.constant 0xFF800000 : f32
    %88 = vector.shape_cast %8 : vector<1x256xi1> to vector<1x256xi1>
    %89 = vector.broadcast %88 : vector<1x256xi1> to vector<8x256xi1>
    %90 = vector.broadcast %cst_37 : f32 to vector<8x256xf32>
    %91 = arith.select %89, %86, %90 : vector<8x256xi1>, vector<8x256xf32>
    %cst_38 = arith.constant 0xFF800000 : f32
    %92 = vector.shape_cast %10 : vector<1x256xi1> to vector<1x256xi1>
    %93 = vector.broadcast %92 : vector<1x256xi1> to vector<8x256xi1>
    %94 = vector.broadcast %cst_38 : f32 to vector<8x256xf32>
    %95 = arith.select %93, %87, %94 : vector<8x256xi1>, vector<8x256xf32>
    %96 = arith.maximumf %91, %95 : vector<8x256xf32>
    %97 = arith.maximumf %84, %96 : vector<8x256xf32>
    %c0_39 = arith.constant 0 : index
    %c128_40 = arith.constant 128 : index
    %98 = vector.load %arg7[%c0_39, %c128_40] : memref<8x401xf32, #tpu.memory_space<vmem>>, vector<8x256xf32>
    tpu.vector_store %arg7[%c0_39, %c128_40], %97 {strides = array<i32>} : memref<8x401xf32, #tpu.memory_space<vmem>>, vector<8x256xf32>,
    %c0_41 = arith.constant 0 : index
    %c127_42 = arith.constant 127 : index
    %99 = vector.load %arg7[%c0_41, %c127_42] : memref<8x401xf32, #tpu.memory_space<vmem>>, vector<8x256xf32>
    %c0_43 = arith.constant 0 : index
    %c129_44 = arith.constant 129 : index
    %100 = vector.load %arg7[%c0_43, %c129_44] : memref<8x401xf32, #tpu.memory_space<vmem>>, vector<8x256xf32>
    %cst_45 = arith.constant 0xFF800000 : f32
    %101 = vector.shape_cast %12 : vector<1x256xi1> to vector<1x256xi1>
    %102 = vector.broadcast %101 : vector<1x256xi1> to vector<8x256xi1>
    %103 = vector.broadcast %cst_45 : f32 to vector<8x256xf32>
    %104 = arith.select %102, %99, %103 : vector<8x256xi1>, vector<8x256xf32>
    %cst_46 = arith.constant 0xFF800000 : f32
    %105 = vector.shape_cast %14 : vector<1x256xi1> to vector<1x256xi1>
    %106 = vector.broadcast %105 : vector<1x256xi1> to vector<8x256xi1>
    %107 = vector.broadcast %cst_46 : f32 to vector<8x256xf32>
    %108 = arith.select %106, %100, %107 : vector<8x256xi1>, vector<8x256xf32>
    %109 = arith.maximumf %104, %108 : vector<8x256xf32>
    %110 = arith.maximumf %97, %109 : vector<8x256xf32>
    %c0_47 = arith.constant 0 : index
    %c0_48 = arith.constant 0 : index
    %111 = vector.load %arg5[%c0_47, %c0_48] : memref<256x64xf32, #tpu.memory_space<vmem>>, vector<256x64xf32>
    %112 = arith.truncf %110 : vector<8x256xf32> to vector<8x256xbf16>
    %113 = arith.extf %112 : vector<8x256xbf16> to vector<8x256xf32>
    %114 = arith.subf %110, %113 : vector<8x256xf32>
    %cst_49 = arith.constant dense<0.000000e+00> : vector<8x64xf32>
    %115 = tpu.matmul %113, %111, %cst_49 {dimension_numbers = #tpu.dot_dimension_numbers<[1], [0], [0], [1], [0, 0, 1, 1], [], []>} : vector<8x256xf32>, vector<256x64xf32>, vector<8x64xf32> -> vector<8x64xf32>
    %cst_50 = arith.constant dense<0.000000e+00> : vector<8x64xf32>
    %116 = tpu.matmul %114, %111, %cst_50 {dimension_numbers = #tpu.dot_dimension_numbers<[1], [0], [0], [1], [0, 0, 1, 1], [], []>} : vector<8x256xf32>, vector<256x64xf32>, vector<8x64xf32> -> vector<8x64xf32>
    %117 = arith.addf %115, %116 : vector<8x64xf32>
    %c0_51 = arith.constant 0 : index
    %c0_52 = arith.constant 0 : index
    %c0_53 = arith.constant 0 : index
    %118 = vector.load %arg3[%c0_51, %c0_52, %c0_53] : memref<4x8x72xf32, #tpu.memory_space<vmem>>, vector<1x8x72xf32>
    %119 = vector.shape_cast %118 : vector<1x8x72xf32> to vector<8x72xf32>
    %c1 = arith.constant 1 : index
    %c0_54 = arith.constant 0 : index
    %c0_55 = arith.constant 0 : index
    %120 = vector.load %arg4[%c1, %c0_54, %c0_55] : memref<5x8x1xf32, #tpu.memory_space<vmem>>, vector<1x8x1xf32>
    %121 = vector.shape_cast %120 : vector<1x8x1xf32> to vector<8x1xf32>
    %c1_56 = arith.constant 1 : index
    %c0_57 = arith.constant 0 : index
    %c0_58 = arith.constant 0 : index
    %122 = vector.load %arg3[%c1_56, %c0_57, %c0_58] : memref<4x8x72xf32, #tpu.memory_space<vmem>>, vector<1x8x72xf32>
    %123 = vector.shape_cast %122 : vector<1x8x72xf32> to vector<8x72xf32>
    %c2 = arith.constant 2 : index
    %c0_59 = arith.constant 0 : index
    %c0_60 = arith.constant 0 : index
    %124 = vector.load %arg4[%c2, %c0_59, %c0_60] : memref<5x8x1xf32, #tpu.memory_space<vmem>>, vector<1x8x1xf32>
    %125 = vector.shape_cast %124 : vector<1x8x1xf32> to vector<8x1xf32>
    %cst_61 = arith.constant 0.000000e+00 : f32
    %126 = vector.broadcast %cst_61 : f32 to vector<8x64xf32>
    %127 = arith.maximumf %117, %126 : vector<8x64xf32>
    %c0_62 = arith.constant 0 : index
    %c128_63 = arith.constant 128 : index
    %128 = vector.load %arg8[%c0_62, %c128_63] : memref<8x201xf32, #tpu.memory_space<vmem>>, vector<8x64xf32>
    tpu.vector_store %arg8[%c0_62, %c128_63], %127 {strides = array<i32>} : memref<8x201xf32, #tpu.memory_space<vmem>>, vector<8x64xf32>,
    %c0_64 = arith.constant 0 : index
    %c119 = arith.constant 119 : index
    %129 = vector.load %arg8[%c0_64, %c119] : memref<8x201xf32, #tpu.memory_space<vmem>>, vector<8x64xf32>
    %130 = arith.andi %23, %27 : vector<1x64xi1>
    %cst_65 = arith.constant 0.000000e+00 : f32
    %131 = vector.shape_cast %130 : vector<1x64xi1> to vector<1x64xi1>
    %132 = vector.broadcast %131 : vector<1x64xi1> to vector<8x64xi1>
    %133 = vector.broadcast %cst_65 : f32 to vector<8x64xf32>
    %134 = arith.select %132, %129, %133 : vector<8x64xi1>, vector<8x64xf32>
    %c0_66 = arith.constant 0 : index
    %c120 = arith.constant 120 : index
    %135 = vector.load %arg8[%c0_66, %c120] : memref<8x201xf32, #tpu.memory_space<vmem>>, vector<8x64xf32>
    %cst_67 = arith.constant 0.000000e+00 : f32
    %136 = vector.shape_cast %23 : vector<1x64xi1> to vector<1x64xi1>
    %137 = vector.broadcast %136 : vector<1x64xi1> to vector<8x64xi1>
    %138 = vector.broadcast %cst_67 : f32 to vector<8x64xf32>
    %139 = arith.select %137, %135, %138 : vector<8x64xi1>, vector<8x64xf32>
    %c0_68 = arith.constant 0 : index
    %c121 = arith.constant 121 : index
    %140 = vector.load %arg8[%c0_68, %c121] : memref<8x201xf32, #tpu.memory_space<vmem>>, vector<8x64xf32>
    %141 = arith.andi %23, %29 : vector<1x64xi1>
    %cst_69 = arith.constant 0.000000e+00 : f32
    %142 = vector.shape_cast %141 : vector<1x64xi1> to vector<1x64xi1>
    %143 = vector.broadcast %142 : vector<1x64xi1> to vector<8x64xi1>
    %144 = vector.broadcast %cst_69 : f32 to vector<8x64xf32>
    %145 = arith.select %143, %140, %144 : vector<8x64xi1>, vector<8x64xf32>
    %c0_70 = arith.constant 0 : index
    %c127_71 = arith.constant 127 : index
    %146 = vector.load %arg8[%c0_70, %c127_71] : memref<8x201xf32, #tpu.memory_space<vmem>>, vector<8x64xf32>
    %cst_72 = arith.constant 0.000000e+00 : f32
    %147 = vector.shape_cast %27 : vector<1x64xi1> to vector<1x64xi1>
    %148 = vector.broadcast %147 : vector<1x64xi1> to vector<8x64xi1>
    %149 = vector.broadcast %cst_72 : f32 to vector<8x64xf32>
    %150 = arith.select %148, %146, %149 : vector<8x64xi1>, vector<8x64xf32>
    %c0_73 = arith.constant 0 : index
    %c128_74 = arith.constant 128 : index
    %151 = vector.load %arg8[%c0_73, %c128_74] : memref<8x201xf32, #tpu.memory_space<vmem>>, vector<8x64xf32>
    %c0_75 = arith.constant 0 : index
    %c129_76 = arith.constant 129 : index
    %152 = vector.load %arg8[%c0_75, %c129_76] : memref<8x201xf32, #tpu.memory_space<vmem>>, vector<8x64xf32>
    %cst_77 = arith.constant 0.000000e+00 : f32
    %153 = vector.shape_cast %29 : vector<1x64xi1> to vector<1x64xi1>
    %154 = vector.broadcast %153 : vector<1x64xi1> to vector<8x64xi1>
    %155 = vector.broadcast %cst_77 : f32 to vector<8x64xf32>
    %156 = arith.select %154, %152, %155 : vector<8x64xi1>, vector<8x64xf32>
    %c0_78 = arith.constant 0 : index
    %c135 = arith.constant 135 : index
    %157 = vector.load %arg8[%c0_78, %c135] : memref<8x201xf32, #tpu.memory_space<vmem>>, vector<8x64xf32>
    %158 = arith.andi %25, %27 : vector<1x64xi1>
    %cst_79 = arith.constant 0.000000e+00 : f32
    %159 = vector.shape_cast %158 : vector<1x64xi1> to vector<1x64xi1>
    %160 = vector.broadcast %159 : vector<1x64xi1> to vector<8x64xi1>
    %161 = vector.broadcast %cst_79 : f32 to vector<8x64xf32>
    %162 = arith.select %160, %157, %161 : vector<8x64xi1>, vector<8x64xf32>
    %c0_80 = arith.constant 0 : index
    %c136 = arith.constant 136 : index
    %163 = vector.load %arg8[%c0_80, %c136] : memref<8x201xf32, #tpu.memory_space<vmem>>, vector<8x64xf32>
    %cst_81 = arith.constant 0.000000e+00 : f32
    %164 = vector.shape_cast %25 : vector<1x64xi1> to vector<1x64xi1>
    %165 = vector.broadcast %164 : vector<1x64xi1> to vector<8x64xi1>
    %166 = vector.broadcast %cst_81 : f32 to vector<8x64xf32>
    %167 = arith.select %165, %163, %166 : vector<8x64xi1>, vector<8x64xf32>
    %c0_82 = arith.constant 0 : index
    %c137 = arith.constant 137 : index
    %168 = vector.load %arg8[%c0_82, %c137] : memref<8x201xf32, #tpu.memory_space<vmem>>, vector<8x64xf32>
    %169 = arith.andi %25, %29 : vector<1x64xi1>
    %cst_83 = arith.constant 0.000000e+00 : f32
    %170 = vector.shape_cast %169 : vector<1x64xi1> to vector<1x64xi1>
    %171 = vector.broadcast %170 : vector<1x64xi1> to vector<8x64xi1>
    %172 = vector.broadcast %cst_83 : f32 to vector<8x64xf32>
    %173 = arith.select %171, %168, %172 : vector<8x64xi1>, vector<8x64xf32>
    %174 = tpu.concatenate %134, %139, %145, %150, %151, %156, %162, %167, %173 in 0 : vector<8x64xf32>, vector<8x64xf32>, vector<8x64xf32>, vector<8x64xf32>, vector<8x64xf32>, vector<8x64xf32>, vector<8x64xf32>, vector<8x64xf32>, vector<8x64xf32> -> vector<72x64xf32>
    %cst_84 = arith.constant dense<0.000000e+00> : vector<8x64xf32>
    %175 = tpu.matmul %119, %174, %cst_84 {dimension_numbers = #tpu.dot_dimension_numbers<[1], [0], [0], [1], [0, 0, 1, 1], [], []>} : vector<8x72xf32>, vector<72x64xf32>, vector<8x64xf32> -> vector<8x64xf32>
    %176 = vector.broadcast %121 : vector<8x1xf32> to vector<8x64xf32>
    %177 = arith.addf %175, %176 : vector<8x64xf32>
    %cst_85 = arith.constant 0.000000e+00 : f32
    %178 = vector.broadcast %cst_85 : f32 to vector<8x64xf32>
    %179 = arith.maximumf %177, %178 : vector<8x64xf32>
    %c0_86 = arith.constant 0 : index
    %c128_87 = arith.constant 128 : index
    %180 = vector.load %arg8[%c0_86, %c128_87] : memref<8x201xf32, #tpu.memory_space<vmem>>, vector<8x64xf32>
    tpu.vector_store %arg8[%c0_86, %c128_87], %179 {strides = array<i32>} : memref<8x201xf32, #tpu.memory_space<vmem>>, vector<8x64xf32>,
    %c0_88 = arith.constant 0 : index
    %c119_89 = arith.constant 119 : index
    %181 = vector.load %arg8[%c0_88, %c119_89] : memref<8x201xf32, #tpu.memory_space<vmem>>, vector<8x64xf32>
    %182 = arith.andi %23, %27 : vector<1x64xi1>
    %cst_90 = arith.constant 0.000000e+00 : f32
    %183 = vector.shape_cast %182 : vector<1x64xi1> to vector<1x64xi1>
    %184 = vector.broadcast %183 : vector<1x64xi1> to vector<8x64xi1>
    %185 = vector.broadcast %cst_90 : f32 to vector<8x64xf32>
    %186 = arith.select %184, %181, %185 : vector<8x64xi1>, vector<8x64xf32>
    %c0_91 = arith.constant 0 : index
    %c120_92 = arith.constant 120 : index
    %187 = vector.load %arg8[%c0_91, %c120_92] : memref<8x201xf32, #tpu.memory_space<vmem>>, vector<8x64xf32>
    %cst_93 = arith.constant 0.000000e+00 : f32
    %188 = vector.shape_cast %23 : vector<1x64xi1> to vector<1x64xi1>
    %189 = vector.broadcast %188 : vector<1x64xi1> to vector<8x64xi1>
    %190 = vector.broadcast %cst_93 : f32 to vector<8x64xf32>
    %191 = arith.select %189, %187, %190 : vector<8x64xi1>, vector<8x64xf32>
    %c0_94 = arith.constant 0 : index
    %c121_95 = arith.constant 121 : index
    %192 = vector.load %arg8[%c0_94, %c121_95] : memref<8x201xf32, #tpu.memory_space<vmem>>, vector<8x64xf32>
    %193 = arith.andi %23, %29 : vector<1x64xi1>
    %cst_96 = arith.constant 0.000000e+00 : f32
    %194 = vector.shape_cast %193 : vector<1x64xi1> to vector<1x64xi1>
    %195 = vector.broadcast %194 : vector<1x64xi1> to vector<8x64xi1>
    %196 = vector.broadcast %cst_96 : f32 to vector<8x64xf32>
    %197 = arith.select %195, %192, %196 : vector<8x64xi1>, vector<8x64xf32>
    %c0_97 = arith.constant 0 : index
    %c127_98 = arith.constant 127 : index
    %198 = vector.load %arg8[%c0_97, %c127_98] : memref<8x201xf32, #tpu.memory_space<vmem>>, vector<8x64xf32>
    %cst_99 = arith.constant 0.000000e+00 : f32
    %199 = vector.shape_cast %27 : vector<1x64xi1> to vector<1x64xi1>
    %200 = vector.broadcast %199 : vector<1x64xi1> to vector<8x64xi1>
    %201 = vector.broadcast %cst_99 : f32 to vector<8x64xf32>
    %202 = arith.select %200, %198, %201 : vector<8x64xi1>, vector<8x64xf32>
    %c0_100 = arith.constant 0 : index
    %c128_101 = arith.constant 128 : index
    %203 = vector.load %arg8[%c0_100, %c128_101] : memref<8x201xf32, #tpu.memory_space<vmem>>, vector<8x64xf32>
    %c0_102 = arith.constant 0 : index
    %c129_103 = arith.constant 129 : index
    %204 = vector.load %arg8[%c0_102, %c129_103] : memref<8x201xf32, #tpu.memory_space<vmem>>, vector<8x64xf32>
    %cst_104 = arith.constant 0.000000e+00 : f32
    %205 = vector.shape_cast %29 : vector<1x64xi1> to vector<1x64xi1>
    %206 = vector.broadcast %205 : vector<1x64xi1> to vector<8x64xi1>
    %207 = vector.broadcast %cst_104 : f32 to vector<8x64xf32>
    %208 = arith.select %206, %204, %207 : vector<8x64xi1>, vector<8x64xf32>
    %c0_105 = arith.constant 0 : index
    %c135_106 = arith.constant 135 : index
    %209 = vector.load %arg8[%c0_105, %c135_106] : memref<8x201xf32, #tpu.memory_space<vmem>>, vector<8x64xf32>
    %210 = arith.andi %25, %27 : vector<1x64xi1>
    %cst_107 = arith.constant 0.000000e+00 : f32
    %211 = vector.shape_cast %210 : vector<1x64xi1> to vector<1x64xi1>
    %212 = vector.broadcast %211 : vector<1x64xi1> to vector<8x64xi1>
    %213 = vector.broadcast %cst_107 : f32 to vector<8x64xf32>
    %214 = arith.select %212, %209, %213 : vector<8x64xi1>, vector<8x64xf32>
    %c0_108 = arith.constant 0 : index
    %c136_109 = arith.constant 136 : index
    %215 = vector.load %arg8[%c0_108, %c136_109] : memref<8x201xf32, #tpu.memory_space<vmem>>, vector<8x64xf32>
    %cst_110 = arith.constant 0.000000e+00 : f32
    %216 = vector.shape_cast %25 : vector<1x64xi1> to vector<1x64xi1>
    %217 = vector.broadcast %216 : vector<1x64xi1> to vector<8x64xi1>
    %218 = vector.broadcast %cst_110 : f32 to vector<8x64xf32>
    %219 = arith.select %217, %215, %218 : vector<8x64xi1>, vector<8x64xf32>
    %c0_111 = arith.constant 0 : index
    %c137_112 = arith.constant 137 : index
    %220 = vector.load %arg8[%c0_111, %c137_112] : memref<8x201xf32, #tpu.memory_space<vmem>>, vector<8x64xf32>
    %221 = arith.andi %25, %29 : vector<1x64xi1>
    %cst_113 = arith.constant 0.000000e+00 : f32
    %222 = vector.shape_cast %221 : vector<1x64xi1> to vector<1x64xi1>
    %223 = vector.broadcast %222 : vector<1x64xi1> to vector<8x64xi1>
    %224 = vector.broadcast %cst_113 : f32 to vector<8x64xf32>
    %225 = arith.select %223, %220, %224 : vector<8x64xi1>, vector<8x64xf32>
    %226 = tpu.concatenate %186, %191, %197, %202, %203, %208, %214, %219, %225 in 0 : vector<8x64xf32>, vector<8x64xf32>, vector<8x64xf32>, vector<8x64xf32>, vector<8x64xf32>, vector<8x64xf32>, vector<8x64xf32>, vector<8x64xf32>, vector<8x64xf32> -> vector<72x64xf32>
    %cst_114 = arith.constant dense<0.000000e+00> : vector<8x64xf32>
    %227 = tpu.matmul %123, %226, %cst_114 {dimension_numbers = #tpu.dot_dimension_numbers<[1], [0], [0], [1], [0, 0, 1, 1], [], []>} : vector<8x72xf32>, vector<72x64xf32>, vector<8x64xf32> -> vector<8x64xf32>
    %228 = vector.broadcast %125 : vector<8x1xf32> to vector<8x64xf32>
    %229 = arith.addf %227, %228 : vector<8x64xf32>
    %230 = arith.addf %117, %229 : vector<8x64xf32>
    %c2_115 = arith.constant 2 : index
    %c0_116 = arith.constant 0 : index
    %c0_117 = arith.constant 0 : index
    %231 = vector.load %arg3[%c2_115, %c0_116, %c0_117] : memref<4x8x72xf32, #tpu.memory_space<vmem>>, vector<1x8x72xf32>
    %232 = vector.shape_cast %231 : vector<1x8x72xf32> to vector<8x72xf32>
    %c3 = arith.constant 3 : index
    %c0_118 = arith.constant 0 : index
    %c0_119 = arith.constant 0 : index
    %233 = vector.load %arg4[%c3, %c0_118, %c0_119] : memref<5x8x1xf32, #tpu.memory_space<vmem>>, vector<1x8x1xf32>
    %234 = vector.shape_cast %233 : vector<1x8x1xf32> to vector<8x1xf32>
    %c3_120 = arith.constant 3 : index
    %c0_121 = arith.constant 0 : index
    %c0_122 = arith.constant 0 : index
    %235 = vector.load %arg3[%c3_120, %c0_121, %c0_122] : memref<4x8x72xf32, #tpu.memory_space<vmem>>, vector<1x8x72xf32>
    %236 = vector.shape_cast %235 : vector<1x8x72xf32> to vector<8x72xf32>
    %c4 = arith.constant 4 : index
    %c0_123 = arith.constant 0 : index
    %c0_124 = arith.constant 0 : index
    %237 = vector.load %arg4[%c4, %c0_123, %c0_124] : memref<5x8x1xf32, #tpu.memory_space<vmem>>, vector<1x8x1xf32>
    %238 = vector.shape_cast %237 : vector<1x8x1xf32> to vector<8x1xf32>
    %cst_125 = arith.constant 0.000000e+00 : f32
    %239 = vector.broadcast %cst_125 : f32 to vector<8x64xf32>
    %240 = arith.maximumf %230, %239 : vector<8x64xf32>
    %c0_126 = arith.constant 0 : index
    %c128_127 = arith.constant 128 : index
    %241 = vector.load %arg8[%c0_126, %c128_127] : memref<8x201xf32, #tpu.memory_space<vmem>>, vector<8x64xf32>
    tpu.vector_store %arg8[%c0_126, %c128_127], %240 {strides = array<i32>} : memref<8x201xf32, #tpu.memory_space<vmem>>, vector<8x64xf32>,
    %c0_128 = arith.constant 0 : index
    %c119_129 = arith.constant 119 : index
    %242 = vector.load %arg8[%c0_128, %c119_129] : memref<8x201xf32, #tpu.memory_space<vmem>>, vector<8x64xf32>
    %243 = arith.andi %23, %27 : vector<1x64xi1>
    %cst_130 = arith.constant 0.000000e+00 : f32
    %244 = vector.shape_cast %243 : vector<1x64xi1> to vector<1x64xi1>
    %245 = vector.broadcast %244 : vector<1x64xi1> to vector<8x64xi1>
    %246 = vector.broadcast %cst_130 : f32 to vector<8x64xf32>
    %247 = arith.select %245, %242, %246 : vector<8x64xi1>, vector<8x64xf32>
    %c0_131 = arith.constant 0 : index
    %c120_132 = arith.constant 120 : index
    %248 = vector.load %arg8[%c0_131, %c120_132] : memref<8x201xf32, #tpu.memory_space<vmem>>, vector<8x64xf32>
    %cst_133 = arith.constant 0.000000e+00 : f32
    %249 = vector.shape_cast %23 : vector<1x64xi1> to vector<1x64xi1>
    %250 = vector.broadcast %249 : vector<1x64xi1> to vector<8x64xi1>
    %251 = vector.broadcast %cst_133 : f32 to vector<8x64xf32>
    %252 = arith.select %250, %248, %251 : vector<8x64xi1>, vector<8x64xf32>
    %c0_134 = arith.constant 0 : index
    %c121_135 = arith.constant 121 : index
    %253 = vector.load %arg8[%c0_134, %c121_135] : memref<8x201xf32, #tpu.memory_space<vmem>>, vector<8x64xf32>
    %254 = arith.andi %23, %29 : vector<1x64xi1>
    %cst_136 = arith.constant 0.000000e+00 : f32
    %255 = vector.shape_cast %254 : vector<1x64xi1> to vector<1x64xi1>
    %256 = vector.broadcast %255 : vector<1x64xi1> to vector<8x64xi1>
    %257 = vector.broadcast %cst_136 : f32 to vector<8x64xf32>
    %258 = arith.select %256, %253, %257 : vector<8x64xi1>, vector<8x64xf32>
    %c0_137 = arith.constant 0 : index
    %c127_138 = arith.constant 127 : index
    %259 = vector.load %arg8[%c0_137, %c127_138] : memref<8x201xf32, #tpu.memory_space<vmem>>, vector<8x64xf32>
    %cst_139 = arith.constant 0.000000e+00 : f32
    %260 = vector.shape_cast %27 : vector<1x64xi1> to vector<1x64xi1>
    %261 = vector.broadcast %260 : vector<1x64xi1> to vector<8x64xi1>
    %262 = vector.broadcast %cst_139 : f32 to vector<8x64xf32>
    %263 = arith.select %261, %259, %262 : vector<8x64xi1>, vector<8x64xf32>
    %c0_140 = arith.constant 0 : index
    %c128_141 = arith.constant 128 : index
    %264 = vector.load %arg8[%c0_140, %c128_141] : memref<8x201xf32, #tpu.memory_space<vmem>>, vector<8x64xf32>
    %c0_142 = arith.constant 0 : index
    %c129_143 = arith.constant 129 : index
    %265 = vector.load %arg8[%c0_142, %c129_143] : memref<8x201xf32, #tpu.memory_space<vmem>>, vector<8x64xf32>
    %cst_144 = arith.constant 0.000000e+00 : f32
    %266 = vector.shape_cast %29 : vector<1x64xi1> to vector<1x64xi1>
    %267 = vector.broadcast %266 : vector<1x64xi1> to vector<8x64xi1>
    %268 = vector.broadcast %cst_144 : f32 to vector<8x64xf32>
    %269 = arith.select %267, %265, %268 : vector<8x64xi1>, vector<8x64xf32>
    %c0_145 = arith.constant 0 : index
    %c135_146 = arith.constant 135 : index
    %270 = vector.load %arg8[%c0_145, %c135_146] : memref<8x201xf32, #tpu.memory_space<vmem>>, vector<8x64xf32>
    %271 = arith.andi %25, %27 : vector<1x64xi1>
    %cst_147 = arith.constant 0.000000e+00 : f32
    %272 = vector.shape_cast %271 : vector<1x64xi1> to vector<1x64xi1>
    %273 = vector.broadcast %272 : vector<1x64xi1> to vector<8x64xi1>
    %274 = vector.broadcast %cst_147 : f32 to vector<8x64xf32>
    %275 = arith.select %273, %270, %274 : vector<8x64xi1>, vector<8x64xf32>
    %c0_148 = arith.constant 0 : index
    %c136_149 = arith.constant 136 : index
    %276 = vector.load %arg8[%c0_148, %c136_149] : memref<8x201xf32, #tpu.memory_space<vmem>>, vector<8x64xf32>
    %cst_150 = arith.constant 0.000000e+00 : f32
    %277 = vector.shape_cast %25 : vector<1x64xi1> to vector<1x64xi1>
    %278 = vector.broadcast %277 : vector<1x64xi1> to vector<8x64xi1>
    %279 = vector.broadcast %cst_150 : f32 to vector<8x64xf32>
    %280 = arith.select %278, %276, %279 : vector<8x64xi1>, vector<8x64xf32>
    %c0_151 = arith.constant 0 : index
    %c137_152 = arith.constant 137 : index
    %281 = vector.load %arg8[%c0_151, %c137_152] : memref<8x201xf32, #tpu.memory_space<vmem>>, vector<8x64xf32>
    %282 = arith.andi %25, %29 : vector<1x64xi1>
    %cst_153 = arith.constant 0.000000e+00 : f32
    %283 = vector.shape_cast %282 : vector<1x64xi1> to vector<1x64xi1>
    %284 = vector.broadcast %283 : vector<1x64xi1> to vector<8x64xi1>
    %285 = vector.broadcast %cst_153 : f32 to vector<8x64xf32>
    %286 = arith.select %284, %281, %285 : vector<8x64xi1>, vector<8x64xf32>
    %287 = tpu.concatenate %247, %252, %258, %263, %264, %269, %275, %280, %286 in 0 : vector<8x64xf32>, vector<8x64xf32>, vector<8x64xf32>, vector<8x64xf32>, vector<8x64xf32>, vector<8x64xf32>, vector<8x64xf32>, vector<8x64xf32>, vector<8x64xf32> -> vector<72x64xf32>
    %cst_154 = arith.constant dense<0.000000e+00> : vector<8x64xf32>
    %288 = tpu.matmul %232, %287, %cst_154 {dimension_numbers = #tpu.dot_dimension_numbers<[1], [0], [0], [1], [0, 0, 1, 1], [], []>} : vector<8x72xf32>, vector<72x64xf32>, vector<8x64xf32> -> vector<8x64xf32>
    %289 = vector.broadcast %234 : vector<8x1xf32> to vector<8x64xf32>
    %290 = arith.addf %288, %289 : vector<8x64xf32>
    %cst_155 = arith.constant 0.000000e+00 : f32
    %291 = vector.broadcast %cst_155 : f32 to vector<8x64xf32>
    %292 = arith.maximumf %290, %291 : vector<8x64xf32>
    %c0_156 = arith.constant 0 : index
    %c128_157 = arith.constant 128 : index
    %293 = vector.load %arg8[%c0_156, %c128_157] : memref<8x201xf32, #tpu.memory_space<vmem>>, vector<8x64xf32>
    tpu.vector_store %arg8[%c0_156, %c128_157], %292 {strides = array<i32>} : memref<8x201xf32, #tpu.memory_space<vmem>>, vector<8x64xf32>,
    %c0_158 = arith.constant 0 : index
    %c119_159 = arith.constant 119 : index
    %294 = vector.load %arg8[%c0_158, %c119_159] : memref<8x201xf32, #tpu.memory_space<vmem>>, vector<8x64xf32>
    %295 = arith.andi %23, %27 : vector<1x64xi1>
    %cst_160 = arith.constant 0.000000e+00 : f32
    %296 = vector.shape_cast %295 : vector<1x64xi1> to vector<1x64xi1>
    %297 = vector.broadcast %296 : vector<1x64xi1> to vector<8x64xi1>
    %298 = vector.broadcast %cst_160 : f32 to vector<8x64xf32>
    %299 = arith.select %297, %294, %298 : vector<8x64xi1>, vector<8x64xf32>
    %c0_161 = arith.constant 0 : index
    %c120_162 = arith.constant 120 : index
    %300 = vector.load %arg8[%c0_161, %c120_162] : memref<8x201xf32, #tpu.memory_space<vmem>>, vector<8x64xf32>
    %cst_163 = arith.constant 0.000000e+00 : f32
    %301 = vector.shape_cast %23 : vector<1x64xi1> to vector<1x64xi1>
    %302 = vector.broadcast %301 : vector<1x64xi1> to vector<8x64xi1>
    %303 = vector.broadcast %cst_163 : f32 to vector<8x64xf32>
    %304 = arith.select %302, %300, %303 : vector<8x64xi1>, vector<8x64xf32>
    %c0_164 = arith.constant 0 : index
    %c121_165 = arith.constant 121 : index
    %305 = vector.load %arg8[%c0_164, %c121_165] : memref<8x201xf32, #tpu.memory_space<vmem>>, vector<8x64xf32>
    %306 = arith.andi %23, %29 : vector<1x64xi1>
    %cst_166 = arith.constant 0.000000e+00 : f32
    %307 = vector.shape_cast %306 : vector<1x64xi1> to vector<1x64xi1>
    %308 = vector.broadcast %307 : vector<1x64xi1> to vector<8x64xi1>
    %309 = vector.broadcast %cst_166 : f32 to vector<8x64xf32>
    %310 = arith.select %308, %305, %309 : vector<8x64xi1>, vector<8x64xf32>
    %c0_167 = arith.constant 0 : index
    %c127_168 = arith.constant 127 : index
    %311 = vector.load %arg8[%c0_167, %c127_168] : memref<8x201xf32, #tpu.memory_space<vmem>>, vector<8x64xf32>
    %cst_169 = arith.constant 0.000000e+00 : f32
    %312 = vector.shape_cast %27 : vector<1x64xi1> to vector<1x64xi1>
    %313 = vector.broadcast %312 : vector<1x64xi1> to vector<8x64xi1>
    %314 = vector.broadcast %cst_169 : f32 to vector<8x64xf32>
    %315 = arith.select %313, %311, %314 : vector<8x64xi1>, vector<8x64xf32>
    %c0_170 = arith.constant 0 : index
    %c128_171 = arith.constant 128 : index
    %316 = vector.load %arg8[%c0_170, %c128_171] : memref<8x201xf32, #tpu.memory_space<vmem>>, vector<8x64xf32>
    %c0_172 = arith.constant 0 : index
    %c129_173 = arith.constant 129 : index
    %317 = vector.load %arg8[%c0_172, %c129_173] : memref<8x201xf32, #tpu.memory_space<vmem>>, vector<8x64xf32>
    %cst_174 = arith.constant 0.000000e+00 : f32
    %318 = vector.shape_cast %29 : vector<1x64xi1> to vector<1x64xi1>
    %319 = vector.broadcast %318 : vector<1x64xi1> to vector<8x64xi1>
    %320 = vector.broadcast %cst_174 : f32 to vector<8x64xf32>
    %321 = arith.select %319, %317, %320 : vector<8x64xi1>, vector<8x64xf32>
    %c0_175 = arith.constant 0 : index
    %c135_176 = arith.constant 135 : index
    %322 = vector.load %arg8[%c0_175, %c135_176] : memref<8x201xf32, #tpu.memory_space<vmem>>, vector<8x64xf32>
    %323 = arith.andi %25, %27 : vector<1x64xi1>
    %cst_177 = arith.constant 0.000000e+00 : f32
    %324 = vector.shape_cast %323 : vector<1x64xi1> to vector<1x64xi1>
    %325 = vector.broadcast %324 : vector<1x64xi1> to vector<8x64xi1>
    %326 = vector.broadcast %cst_177 : f32 to vector<8x64xf32>
    %327 = arith.select %325, %322, %326 : vector<8x64xi1>, vector<8x64xf32>
    %c0_178 = arith.constant 0 : index
    %c136_179 = arith.constant 136 : index
    %328 = vector.load %arg8[%c0_178, %c136_179] : memref<8x201xf32, #tpu.memory_space<vmem>>, vector<8x64xf32>
    %cst_180 = arith.constant 0.000000e+00 : f32
    %329 = vector.shape_cast %25 : vector<1x64xi1> to vector<1x64xi1>
    %330 = vector.broadcast %329 : vector<1x64xi1> to vector<8x64xi1>
    %331 = vector.broadcast %cst_180 : f32 to vector<8x64xf32>
    %332 = arith.select %330, %328, %331 : vector<8x64xi1>, vector<8x64xf32>
    %c0_181 = arith.constant 0 : index
    %c137_182 = arith.constant 137 : index
    %333 = vector.load %arg8[%c0_181, %c137_182] : memref<8x201xf32, #tpu.memory_space<vmem>>, vector<8x64xf32>
    %334 = arith.andi %25, %29 : vector<1x64xi1>
    %cst_183 = arith.constant 0.000000e+00 : f32
    %335 = vector.shape_cast %334 : vector<1x64xi1> to vector<1x64xi1>
    %336 = vector.broadcast %335 : vector<1x64xi1> to vector<8x64xi1>
    %337 = vector.broadcast %cst_183 : f32 to vector<8x64xf32>
    %338 = arith.select %336, %333, %337 : vector<8x64xi1>, vector<8x64xf32>
    %339 = tpu.concatenate %299, %304, %310, %315, %316, %321, %327, %332, %338 in 0 : vector<8x64xf32>, vector<8x64xf32>, vector<8x64xf32>, vector<8x64xf32>, vector<8x64xf32>, vector<8x64xf32>, vector<8x64xf32>, vector<8x64xf32>, vector<8x64xf32> -> vector<72x64xf32>
    %cst_184 = arith.constant dense<0.000000e+00> : vector<8x64xf32>
    %340 = tpu.matmul %236, %339, %cst_184 {dimension_numbers = #tpu.dot_dimension_numbers<[1], [0], [0], [1], [0, 0, 1, 1], [], []>} : vector<8x72xf32>, vector<72x64xf32>, vector<8x64xf32> -> vector<8x64xf32>
    %341 = vector.broadcast %238 : vector<8x1xf32> to vector<8x64xf32>
    %342 = arith.addf %340, %341 : vector<8x64xf32>
    %343 = arith.addf %230, %342 : vector<8x64xf32>
    %c0_185 = arith.constant 0 : index
    %c0_186 = arith.constant 0 : index
    %c0_187 = arith.constant 0 : index
    %344 = vector.load %arg6[%c0_185, %c0_186, %c0_187] : memref<1x8x64xf32, #tpu.memory_space<vmem>>, vector<1x8x64xf32>
    %345 = vector.shape_cast %344 : vector<1x8x64xf32> to vector<8x64xf32>
    %346 = vector.shape_cast %343 : vector<8x64xf32> to vector<1x8x64xf32>
    tpu.vector_store %arg6[%c0_185, %c0_186, %c0_187], %346 {strides = array<i32>} : memref<1x8x64xf32, #tpu.memory_space<vmem>>, vector<1x8x64xf32>,
    return
  }
  func.func @transform_0(%arg0: i32) -> (i32, i32, i32) {
    %c0_i32 = arith.constant 0 : i32
    %c0_i32_0 = arith.constant 0 : i32
    %c0_i32_1 = arith.constant 0 : i32
    return %arg0, %c0_i32, %c0_i32_0 : i32, i32, i32
  }
  func.func @transform_1(%arg0: i32) -> (i32, i32) {
    %c0_i32 = arith.constant 0 : i32
    %c0_i32_0 = arith.constant 0 : i32
    %c0_i32_1 = arith.constant 0 : i32
    return %c0_i32, %c0_i32_0 : i32, i32
  }
  func.func @transform_2(%arg0: i32) -> (i32, i32, i32) {
    %c0_i32 = arith.constant 0 : i32
    %c0_i32_0 = arith.constant 0 : i32
    %c0_i32_1 = arith.constant 0 : i32
    %c0_i32_2 = arith.constant 0 : i32
    return %c0_i32, %c0_i32_0, %c0_i32_1 : i32, i32, i32
  }
  func.func @transform_3(%arg0: i32) -> (i32, i32, i32) {
    %c0_i32 = arith.constant 0 : i32
    %c0_i32_0 = arith.constant 0 : i32
    %c0_i32_1 = arith.constant 0 : i32
    %c0_i32_2 = arith.constant 0 : i32
    return %c0_i32, %c0_i32_0, %c0_i32_1 : i32, i32, i32
  }
  func.func @transform_4(%arg0: i32) -> (i32, i32) {
    %c0_i32 = arith.constant 0 : i32
    %c0_i32_0 = arith.constant 0 : i32
    %c0_i32_1 = arith.constant 0 : i32
    return %c0_i32, %c0_i32_0 : i32, i32
  }
  func.func @transform_5(%arg0: i32) -> (i32, i32, i32) {
    %c0_i32 = arith.constant 0 : i32
    %c0_i32_0 = arith.constant 0 : i32
    %c0_i32_1 = arith.constant 0 : i32
    return %arg0, %c0_i32, %c0_i32_0 : i32, i32, i32
  }
}

</mosaic_0001>

<bundles_post_ra>
// kernel: tpu_custom_call.1
= control target key start
LH: loop header
LB: loop body
LE: loop exit
PB: predicated region body
PF: predicated region fallthrough
CT: control target
= control target key end

     0   :  { %10 = vsyncpa [#allocation5], 0  ;;  %s2449_s0 = inlined_call_operand.vmem [shape: f32[2,8,256], index: 0, kind: input, shape index: {}]   ;;  %s2450_s1 = inlined_call_operand.vmem [shape: f32[8,72], index: 1, kind: input, shape index: {}]   ;;  %s2451_s2 = inlined_call_operand.vmem [shape: f32[4,8,72], index: 2, kind: input, shape index: {}]   ;;  %s2452_s3 = inlined_call_operand.vmem [shape: f32[5,8,1], index: 3, kind: input, shape index: {}]   ;;  %s2453_s4 = inlined_call_operand.vmem [shape: f32[256,64], index: 4, kind: input, shape index: {}]   ;;  %s2454_s5 = inlined_call_operand.hbm [shape: f32[2,8,64], index: 5, kind: output, shape index: {}]  }
   0x1   :  { %12 = vsyncpa [#allocation5 + $0x1], 0  ;;  %s1800_s18 = smov 0   ;;  %s1802_s19 = smov 0  }
   0x2   :  { %s1804_s20 = smov 0   ;;  %s1806_s21 = smov 0  }
   0x3 LB: > { %s1821_s22 = sadd.s32 4294967295, %s1750_s21   ;;  %s1366_s23 = sadd.s32 4294967294, %s1750_s21   ;;  %s1750_s21 = sphi %s1806_s21, %s2480_s21   ;;  %s1746_s20 = sphi %s1804_s20, %s2479_s20   ;;  %s1742_s19 = sphi %s1802_s19, %s2478_s19   ;;  %s1738_s18 = sphi %s1800_s18, %s2477_s18  }
   0x4   : > { %s1825_s24 = sadd.s32 1, %s1750_s21   ;;  %s135_s25 = sadd.s32 1, %s1746_s20 }
   0x5   : > { %s132_s26 = ssub.s32 %s1750_s21, %s1825_s24  ;;  %p145_p0 = scmp.ne.s32.totalorder %s1746_s20, %s1742_s19 }
   0x6   : > { %p133_p1 = scmp.eq.s32.totalorder %s132_s26, 0  ;;  %p146_p2 = scmp.eq.s32.totalorder %s1821_s22, 1 }
   0x7   : > { %p151_p3 = scmp.ne.s32.totalorder %s1742_s19, %s1738_s18  ;;  %p152_p4 = scmp.eq.s32.totalorder %s1366_s23, 1 }
   0x8   : > { %s1836_s27 = scalar_select %p133_p1, %s1746_s20, %s135_s25  }
   0x9   : > { %p1838_p5 = por %p146_p2, %p145_p0  ;;  %p1842_p6 = por %p152_p4, %p151_p3 }
   0xa   : > { %p1369_p7 = scmp.ge.s32.totalorder %s1750_s21, 1  ;;  %p190_p8 = scmp.lt.s32.totalorder %s1750_s21, 3 }
   0xc   : > { %p191_p9 = pnand %p1369_p7, %p190_p8 }
   0xd   : > { %s1752_s30 = smov (!%p191_p9), 111   ;;  %s1753_s6 = smov (!%p191_p9), 113  }
   0xe   : > { %194 = sbr.rel (%p191_p9) target bundleno = 2223 (0x8af), region = 40  ;;  %p218_p10 = scmp.lt.s32.totalorder (!%p191_p9), %s1821_s22, 1 }
   0xf   : > { %s1754_s8 = smov (!%p191_p9), 112   ;;  %s1755_s13 = smov (!%p191_p9), 127  }
  0x10   : > { %s1756_s14 = smov (!%p191_p9), 1   ;;  %s1757_s15 = smov (!%p191_p9), 15  }
  0x11   : > { %s1759_s16 = smov (!%p191_p9), 16   ;;  %s1761_s17 = smov (!%p191_p9), 17  }
  0x12   : > { %s1763_s23 = smov (!%p191_p9), 119   ;;  %s1764_s25 = smov (!%p191_p9), 121  }
  0x13   : > { %v1848_v0 = vld [vmem:[#allocation2 + $0x10] sm:$0xff]  ;;  %s219_s7 = scalar_select %p218_p10, %s1821_s22, 1  ;;  %v1879_v3 = vld [vmem:[#allocation2 + $0x18] sm:$0xff]  ;;  %v1758_v4 = vmov 0.0   ;;  %v1760_v5 = vmov 0   ;;  %v252_v6 = vld [vmem:[%s2452_s3] sm:$0xff]  ;;  %v223_v7 = vlaneseq }
  0x14   : > { %396 = vrot.lane.b32.xlu0 %v1848_v0, %s1752_s30  ;;  %360 = vrot.lane.b32.xlu1 %v1848_v0, %s1753_s6  ;;  %vm398_vm4 = vcmask 908288   ;;  %vm379_vm7 = vcmask 916480   ;;  %vm362_vm10 = vcmask 924672   ;;  %vm343_vm13 = vcmask 1039360   ;;  %v251_v59 = vld [vmem:[%s2450_s1] sm:$0xff]  ;;  %s1765_s26 = smov 7  }
  0x15   : > { %s1437_s9 = sshll.u32 %s219_s7, 4  ;;  %478 = vmatprep.mubr.f32.mxu0 %v1758_v4  ;;  %1688 = vset.pattern.permute.xlu0 %v1760_v5  ;;  %v1903_v8 = vand.u32 127, %v223_v7  ;;  %vm324_vm14 = vcmask 7168   ;;  %v591_v7 = vld [vmem:[%s2453_s4 + $0xf0] sm:$0xff] }
  0x16   : > { %s222_s12 = scalar_lea.vmem %s2449_s0, %s1437_s9  ;;  %1689 = vset.pattern.permute.xlu1 %v1760_v5  ;;  %v592_v5 = vld [vmem:[%s2453_s4 + $0xf8] sm:$0xff] }
  0x17   : > { %v1859_v1 = vld [vmem:[%s222_s12 + $0x8] sm:$0xff]  ;;  %v1861_v2 = vld [vmem:[%s222_s12] sm:$0xff]  ;;  %v225_v9 = vadd.s32 128, %v1903_v8  ;;  %v228_v11 = vand.u32 255, %v1903_v8  ;;  %v226_v16 = vand.u32 15, %v1903_v8  ;;  %1438 = vmatprep.subr.mxu1 %v592_v5 }
  0x18   : > { %377 = vrot.lane.b32.xlu0 %v1848_v0, %s1754_s8  ;;  %392 = vrot.lane.b32.xlu1 %v1861_v2, %s1752_s30 }
  0x19   : > { %v229_v10 = vand.u32 255, %v225_v9  ;;  %v227_v13 = vand.u32 15, %v225_v9  ;;  %v1910_v17 = vshra.s32 %v228_v11, 4  ;;  %vm1918_vm3 = vcmp.le.s32.totalorder %v226_v16, 14  ;;  %v575_v9 = vld [vmem:[%s2453_s4 + $0x70] sm:$0xff]  ;;  %v574_v11 = vld [vmem:[%s2453_s4 + $0x68] sm:$0xff] }
  0x1a   : > { %vm1937_vm9 = vcmp.ge.s32.totalorder %v226_v16, 1  ;;  %v572_v16 = vld [vmem:[%s2453_s4 + $0x58] sm:$0xff] }
  0x1b   : > { %v1907_v14 = vshra.s32 %v229_v10, 4  ;;  %vm1913_vm1 = vcmp.le.s32.totalorder %v227_v13, 14  ;;  %vm234_vm2 = vcmp.le.s32.totalorder %v1910_v17, 14  ;;  %vm1931_vm8 = vcmp.ge.s32.totalorder %v227_v13, 1  ;;  %v590_v10 = vld [vmem:[%s2453_s4 + $0xe8] sm:$0xff]  ;;  %v573_v13 = vld [vmem:[%s2453_s4 + $0x60] sm:$0xff] }
  0x1c   : > { %394 = vrot.lane.b32.xlu0 %v1859_v1, %s1752_s30  ;;  %375 = vrot.lane.b32.xlu1 %v1859_v1, %s1754_s8  ;;  %vm386_vm6 = vmand %vm234_vm2, %vm1918_vm3  ;;  %s1768_s30 = smov 9  }
  0x1d   : > { %vm235_vm0 = vcmp.le.s32.totalorder %v1907_v14, 14  ;;  %vm350_vm12 = vmand %vm234_vm2, %vm1937_vm9  ;;  %vm233_vm15 = vcmp.ge.s32.totalorder %v1907_v14, 1  ;;  %v563_v14 = vld [vmem:[%s2453_s4 + $0x10] sm:$0xff] }
  0x1e   : > { %vm387_vm5 = vmand %vm235_vm0, %vm1913_vm1 }
  0x1f   : > { %vm351_vm11 = vmand %vm235_vm0, %vm1931_vm8 }
  0x20   : > { %358 = vrot.lane.b32.xlu0 %v1859_v1, %s1753_s6  ;;  %373 = vrot.lane.b32.xlu1 %v1861_v2, %s1754_s8 }
  0x24   : > { %356 = vrot.lane.b32.xlu0 %v1861_v2, %s1753_s6  ;;  %339 = vrot.lane.b32.xlu1 %v1859_v1, %s1755_s13 }
  0x28   : > { %341 = vrot.lane.b32.xlu0 %v1848_v0, %s1755_s13  ;;  %337 = vrot.lane.b32.xlu1 %v1861_v2, %s1755_s13 }
  0x2c   : > { %320 = vrot.lane.b32.xlu0 %v1861_v2, %s1756_s14  ;;  %322 = vrot.lane.b32.xlu1 %v1859_v1, %s1756_s14 }
  0x30   : > { %318 = vrot.lane.b32.xlu0 %v1879_v3, %s1756_s14  ;;  %303 = vrot.lane.b32.xlu1 %v1861_v2, %s1757_s15 }
  0x34   : > { %305 = vrot.lane.b32.xlu0 %v1859_v1, %s1757_s15  ;;  %301 = vrot.lane.b32.xlu1 %v1879_v3, %s1757_s15 }
  0x38   : > { %284 = vrot.lane.b32.xlu0 %v1861_v2, %s1759_s16  ;;  %286 = vrot.lane.b32.xlu1 %v1859_v1, %s1759_s16 }
  0x3c   : > { %282 = vrot.lane.b32.xlu0 %v1879_v3, %s1759_s16  ;;  %267 = vrot.lane.b32.xlu1 %v1861_v2, %s1761_s17 }
  0x40   : > { %269 = vrot.lane.b32.xlu0 %v1859_v1, %s1761_s17  ;;  %265 = vrot.lane.b32.xlu1 %v1879_v3, %s1761_s17  ;;  %s1762_s17 = smov 120  }
  0x44   : > { %407 = vperm.xlu0 %1688, %v252_v6   ;;  %494 = vrot.lane.b32.xlu1 %v1879_v3, %s1759_s16  ;;  %v576_v6 = vld [vmem:[%s2453_s4 + $0x78] sm:$0xff] }
  0x45   : > { %1439 = vmatpush3.msra.mxu1 %v576_v6 }
  0x46   : > { %1440 = vmatprep.subr.mxu1 %v591_v7 }
  0x47   : > { %1441 = vmatpush3.msra.mxu1 %v575_v9 }
  0x48   : > { %1442 = vmatprep.subr.mxu1 %v590_v10 }
  0x49   : > { %1443 = vmatpush3.msra.mxu1 %v574_v11 }
  0x86   : > { %v397_v12 = vpop.permute.xlu0 %396  ;;  %v361_v15 = vpop.permute.xlu1 %360 }
  0x8a   : > { %v378_v18 = vpop.permute.xlu0 %377  ;;  %v393_v21 = vpop.permute.xlu1 %392 }
  0x8e   : > { %v395_v22 = vpop.permute.xlu0 %394  ;;  %v376_v25 = vpop.permute.xlu1 %375 }
  0x8f   : > { %v400_v23 = vsel %vm398_vm4, %v395_v22, %v397_v12  ;;  %v399_v24 = vsel %vm398_vm4, %v393_v21, %v395_v22  ;;  %v381_v27 = vsel %vm379_vm7, %v376_v25, %v378_v18  ;;  %vm307_vm4 = vcmask 121856   ;;  %v589_v12 = vld [vmem:[%s2453_s4 + $0xe0] sm:$0xff]  ;;  %v571_v18 = vld [vmem:[%s2453_s4 + $0x50] sm:$0xff]  ;;  %v586_v21 = vld [vmem:[%s2453_s4 + $0xc8] sm:$0xff] }
  0x90   : > { %1373 = vmatprep.subr.msk.mxu0 %vm387_vm5, %v400_v23  ;;  %vm296_vm5 = vmand %vm233_vm15, %vm1913_vm1  ;;  %1444 = vmatprep.subr.mxu1 %v589_v12  ;;  %v570_v22 = vld [vmem:[%s2453_s4 + $0x48] sm:$0xff] }
  0x91   : > { %1374 = vmatpush1.msk.msra.mxu0 %vm386_vm6, %v399_v24  ;;  %vm232_vm6 = vcmp.ge.s32.totalorder %v1910_v17, 1  ;;  %1445 = vmatpush3.msra.mxu1 %v573_v13  ;;  %v585_v24 = vld [vmem:[%s2453_s4 + $0xc0] sm:$0xff] }
  0x92   : > { %v359_v26 = vpop.permute.xlu0 %358  ;;  %1375 = vmatprep.subr.msk.mxu0 %vm235_vm0, %v381_v27  ;;  %v374_v30 = vpop.permute.xlu1 %373  ;;  %v584_v27 = vld [vmem:[%s2453_s4 + $0xb8] sm:$0xff] }
  0x93   : > { %v380_v32 = vsel %vm379_vm7, %v374_v30, %v376_v25  ;;  %v364_v33 = vsel %vm362_vm10, %v359_v26, %v361_v15  ;;  %v588_v15 = vld [vmem:[%s2453_s4 + $0xd8] sm:$0xff]  ;;  %v569_v25 = vld [vmem:[%s2453_s4 + $0x40] sm:$0xff] }
  0x94   : > { %1376 = vmatpush1.msk.msra.mxu0 %vm234_vm2, %v380_v32  ;;  %1446 = vmatprep.subr.mxu1 %v588_v15  ;;  %v583_v32 = vld [vmem:[%s2453_s4 + $0xb0] sm:$0xff] }
  0x95   : > { %1377 = vmatprep.subr.msk.mxu0 %vm351_vm11, %v364_v33  ;;  %vm288_vm11 = vcmask 130048   ;;  %1447 = vmatpush3.msra.mxu1 %v572_v16 }
  0x96   : > { %v357_v31 = vpop.permute.xlu0 %356  ;;  %v340_v35 = vpop.permute.xlu1 %339 }
  0x97   : > { %v363_v34 = vsel %vm362_vm10, %v357_v31, %v359_v26  ;;  %vm295_vm10 = vmand %vm232_vm6, %vm1918_vm3  ;;  %v568_v31 = vld [vmem:[%s2453_s4 + $0x38] sm:$0xff] }
  0x98   : > { %1378 = vmatpush1.msk.msra.mxu0 %vm350_vm12, %v363_v34  ;;  %vm271_vm12 = vcmask 138240   ;;  %v567_v34 = vld [vmem:[%s2453_s4 + $0x30] sm:$0xff] }
  0x9a   : > { %v342_v36 = vpop.permute.xlu0 %341  ;;  %v338_v38 = vpop.permute.xlu1 %337 }
  0x9b   : > { %v345_v37 = vsel %vm343_vm13, %v340_v35, %v342_v36  ;;  %v344_v40 = vsel %vm343_vm13, %v338_v38, %v340_v35  ;;  %v582_v36 = vld [vmem:[%s2453_s4 + $0xa8] sm:$0xff] }
  0x9c   : > { %1379 = vmatprep.subr.msk.mxu0 %vm1913_vm1, %v345_v37  ;;  %v566_v38 = vld [vmem:[%s2453_s4 + $0x28] sm:$0xff] }
  0x9d   : > { %1380 = vmatpush1.msk.msra.mxu0 %vm1918_vm3, %v344_v40 }
  0x9e   : > { %v321_v39 = vpop.permute.xlu0 %320  ;;  %436 = vmatprep.subr.mxu0 %v1859_v1  ;;  %v323_v41 = vpop.permute.xlu1 %322 }
  0x9f   : > { %437 = vmatpush1.msra.mxu0 %v1861_v2  ;;  %v326_v43 = vsel %vm324_vm14, %v321_v39, %v323_v41  ;;  %v581_v41 = vld [vmem:[%s2453_s4 + $0xa0] sm:$0xff] }
  0xa0   : > { %1381 = vmatprep.subr.msk.mxu0 %vm1931_vm8, %v326_v43 }
  0xa2   : > { %v319_v42 = vpop.permute.xlu0 %318  ;;  %v304_v45 = vpop.permute.xlu1 %303 }
  0xa3   : > { %v325_v44 = vsel %vm324_vm14, %v319_v42, %v321_v39 }
  0xa4   : > { %1382 = vmatpush1.msk.msra.mxu0 %vm1937_vm9, %v325_v44 }
  0xa6   : > { %v306_v46 = vpop.permute.xlu0 %305  ;;  %v302_v48 = vpop.permute.xlu1 %301 }
  0xa7   : > { %v309_v47 = vsel %vm307_vm4, %v304_v45, %v306_v46  ;;  %v308_v50 = vsel %vm307_vm4, %v302_v48, %v304_v45  ;;  %vm257_vm4 = vmand %vm233_vm15, %vm1931_vm8  ;;  %v565_v45 = vld [vmem:[%s2453_s4 + $0x20] sm:$0xff]  ;;  %v580_v48 = vld [vmem:[%s2453_s4 + $0x98] sm:$0xff] }
  0xa8   : > { %1383 = vmatprep.subr.msk.mxu0 %vm296_vm5, %v309_v47  ;;  %vm256_vm5 = vmand %vm232_vm6, %vm1937_vm9 }
  0xa9   : > { %1384 = vmatpush1.msk.msra.mxu0 %vm295_vm10, %v308_v50  ;;  %vm410_vm10 = vcmask 588800   ;;  %v564_v50 = vld [vmem:[%s2453_s4 + $0x18] sm:$0xff] }
  0xaa   : > { %v285_v49 = vpop.permute.xlu0 %284  ;;  %v287_v51 = vpop.permute.xlu1 %286 }
  0xab   : > { %v290_v53 = vsel %vm288_vm11, %v285_v49, %v287_v51 }
  0xac   : > { %1385 = vmatprep.subr.msk.mxu0 %vm233_vm15, %v290_v53  ;;  %v579_v53 = vld [vmem:[%s2453_s4 + $0x90] sm:$0xff] }
  0xae   : > { %v283_v52 = vpop.permute.xlu0 %282  ;;  %v268_v55 = vpop.permute.xlu1 %267 }
  0xaf   : > { %v289_v54 = vsel %vm288_vm11, %v283_v52, %v285_v49 }
  0xb0   : > { %1386 = vmatpush1.msk.msra.mxu0 %vm232_vm6, %v289_v54 }
  0xb2   : > { %v270_v56 = vpop.permute.xlu0 %269  ;;  %v266_v58 = vpop.permute.xlu1 %265 }
  0xb3   : > { %v273_v57 = vsel %vm271_vm12, %v268_v55, %v270_v56  ;;  %v272_v60 = vsel %vm271_vm12, %v266_v58, %v268_v55  ;;  %v578_v55 = vld [vmem:[%s2453_s4 + $0x88] sm:$0xff]  ;;  %v561_v58 = vld [vmem:[%s2453_s4] sm:$0xff]  ;;  %vm760_vm12 = vcmask 72704  }
  0xb4   : > { %1387 = vmatprep.subr.msk.mxu0 %vm257_vm4, %v273_v57  ;;  %v562_v56 = vld [vmem:[%s2453_s4 + $0x8] sm:$0xff]  ;;  %v577_v57 = vld [vmem:[%s2453_s4 + $0x80] sm:$0xff] }
  0xb5   : > { %1388 = vmatpush1.msk.msra.mxu0 %vm256_vm5, %v272_v60 }
  0xb6   : > { %1389 = vmatmul.mubr.msk.f32.vlgmr.msra.gmra.mxu0 %vm410_vm10, %v251_v59  ;;  %1473 = vmatprep.subr.mxu0 %v592_v5  ;;  %v495_v23 = vpop.permute.xlu1 %494 }
  0xb7   : > { %1474 = vmatpush3.msra.mxu0 %v576_v6 }
  0xb8   : > { %1475 = vmatprep.subr.mxu0 %v591_v7 }
  0xb9   : > { %1476 = vmatpush3.msra.mxu0 %v575_v9 }
  0xba   : > { %1477 = vmatprep.subr.mxu0 %v590_v10 }
  0xbb   : > { %1478 = vmatpush3.msra.mxu0 %v574_v11 }
  0xbc   : > { %1479 = vmatprep.subr.mxu0 %v589_v12 }
  0xbd   : > { %1480 = vmatpush3.msra.mxu0 %v573_v13 }
  0xbe   : > { %1481 = vmatprep.subr.mxu0 %v588_v15 }
  0xbf   : > { %v408_v61 = vpop.permute.xlu0 %407  ;;  %1482 = vmatpush3.msra.mxu0 %v572_v16 }
 0x176   : > { %v480_v62 = vpop.f32.mrf.mxu0 }
 0x177   : > { %v1994_v63 = vadd.f32 %v480_v62, %v408_v61 }
 0x178   : > { %v482_v1 = vpop.f32.mrf.mxu0 }
 0x179   : > { %v1996_v2 = vadd.f32 %v482_v1, %v408_v61  ;;  %496 = vrot.lane.b32.xlu1 %v1994_v63, %s1759_s16 }
 0x17b   : > { %498 = vrot.lane.b32.xlu0 %v1996_v2, %s1759_s16 }
 0x17d   : > { %507 = vrot.lane.b32.xlu1 %v1994_v63, %s1754_s8 }
 0x17f   : > { %509 = vrot.lane.b32.xlu0 %v1996_v2, %s1754_s8 }
 0x181   : > { %511 = vrot.lane.b32.xlu1 %v1848_v0, %s1754_s8  ;;  %s1767_s8 = smov 8  }
 0x185   : > { %549 = vrot.lane.b32.xlu1 %v1848_v0, %s1755_s13  ;;  %v587_v0 = vld [vmem:[%s2453_s4 + $0xd0] sm:$0xff] }
 0x186   : > { %1483 = vmatprep.subr.mxu0 %v587_v0  ;;  %1448 = vmatprep.subr.mxu1 %v587_v0 }
 0x187   : > { %1484 = vmatpush3.msra.mxu0 %v571_v18  ;;  %1449 = vmatpush3.msra.mxu1 %v571_v18 }
 0x188   : > { %1485 = vmatprep.subr.mxu0 %v586_v21  ;;  %1450 = vmatprep.subr.mxu1 %v586_v21 }
 0x189   : > { %1486 = vmatpush3.msra.mxu0 %v570_v22  ;;  %1451 = vmatpush3.msra.mxu1 %v570_v22 }
 0x18a   : > { %1487 = vmatprep.subr.mxu0 %v585_v24  ;;  %1452 = vmatprep.subr.mxu1 %v585_v24 }
 0x18b   : > { %1488 = vmatpush3.msra.mxu0 %v569_v25  ;;  %1453 = vmatpush3.msra.mxu1 %v569_v25 }
 0x18c   : > { %1489 = vmatprep.subr.mxu0 %v584_v27  ;;  %1454 = vmatprep.subr.mxu1 %v584_v27 }
 0x18d   : > { %1490 = vmatpush3.msra.mxu0 %v568_v31  ;;  %1455 = vmatpush3.msra.mxu1 %v568_v31 }
 0x18e   : > { %1491 = vmatprep.subr.mxu0 %v583_v32  ;;  %1456 = vmatprep.subr.mxu1 %v583_v32 }
 0x18f   : > { %1492 = vmatpush3.msra.mxu0 %v567_v34  ;;  %1457 = vmatpush3.msra.mxu1 %v567_v34  ;;  %v241_v34 = vand.u32 63, %v1903_v8 }
 0x190   : > { %1493 = vmatprep.subr.mxu0 %v582_v36  ;;  %1458 = vmatprep.subr.mxu1 %v582_v36 }
 0x191   : > { %1494 = vmatpush3.msra.mxu0 %v566_v38  ;;  %1459 = vmatpush3.msra.mxu1 %v566_v38  ;;  %v2173_v36 = vshra.s32 %v241_v34, 3 }
 0x192   : > { %1495 = vmatprep.subr.mxu0 %v581_v41  ;;  %1460 = vmatprep.subr.mxu1 %v581_v41 }
 0x193   : > { %1496 = vmatpush3.msra.mxu0 %v565_v45  ;;  %1461 = vmatpush3.msra.mxu1 %v565_v45 }
 0x194   : > { %1497 = vmatprep.subr.mxu0 %v580_v48  ;;  %1462 = vmatprep.subr.mxu1 %v580_v48 }
 0x195   : > { %1498 = vmatpush3.msra.mxu0 %v564_v50  ;;  %1463 = vmatpush3.msra.mxu1 %v564_v50 }
 0x196   : > { %1499 = vmatprep.subr.mxu0 %v579_v53  ;;  %1464 = vmatprep.subr.mxu1 %v579_v53 }
 0x197   : > { %1500 = vmatpush3.msra.mxu0 %v563_v14  ;;  %1465 = vmatpush3.msra.mxu1 %v563_v14 }
 0x198   : > { %1501 = vmatprep.subr.mxu0 %v578_v55  ;;  %1466 = vmatprep.subr.mxu1 %v578_v55  ;;  %v739_v55 = vld [vmem:[%s2451_s2] sm:$0xff] }
 0x199   : > { %1502 = vmatpush3.msra.mxu0 %v562_v56  ;;  %1467 = vmatpush3.msra.mxu1 %v562_v56 }
 0x19a   : > { %1503 = vmatprep.subr.mxu0 %v577_v57  ;;  %1468 = vmatprep.subr.mxu1 %v577_v57 }
 0x19b   : > { %1504 = vmatpush3.msra.mxu0 %v561_v58  ;;  %1469 = vmatpush3.msra.mxu1 %v561_v58 }
 0x19c   : > { %1548 = vmatprep.subr.mxu1 %v1758_v4  ;;  %1569 = vmatprep.subr.mxu0 %v1758_v4 }
 0x1eb   : > { %v497_v26 = vpop.permute.xlu1 %496 }
 0x1ec   : > { %v500_v35 = vsel %vm288_vm11, %v495_v23, %v497_v26  ;;  %v2140_v23 = vld [vmem:[#allocation3] sm:$0xff] }
 0x1ed   : > { %v499_v30 = vpop.permute.xlu0 %498  ;;  %v504_v42 = vsel %vm232_vm6, %v500_v35, -inf  ;;  %v240_v35 = vand.u32 7, %v1903_v8 }
 0x1ee   : > { %v501_v39 = vsel %vm288_vm11, %v497_v26, %v499_v30  ;;  %vm770_vm11 = vcmask 64512  }
 0x1ef   : > { %v508_v33 = vpop.permute.xlu1 %507  ;;  %v505_v17 = vsel %vm233_vm15, %v501_v39, -inf  ;;  %vm781_vm15 = vcmask 56320  }
 0x1f1   : > { %v510_v37 = vpop.permute.xlu0 %509 }
 0x1f2   : > { %v513_v40 = vsel %vm379_vm7, %v508_v33, %v510_v37  ;;  %v1390_v33 = vld [vmem:[%s2452_s3 + $0x8] sm:$0xff] }
 0x1f3   : > { %v517_v43 = vsel %vm234_vm2, %v513_v40, -inf  ;;  %v512_v44 = vpop.permute.xlu1 %511  ;;  %vm244_vm2 = vcmp.le.s32.totalorder %v2173_v36, 6 }
 0x1f4   : > { %v519_v46 = vmax.f32 %v504_v42, %v517_v43  ;;  %v514_v47 = vsel %vm379_vm7, %v510_v37, %v512_v44 }
 0x1f5   : > { %v518_v49 = vsel %vm235_vm0, %v514_v47, -inf  ;;  %vm747_vm0 = vcmask 523264  }
 0x1f6   : > { %v521_v51 = vmax.f32 %v1994_v63, %v519_v46  ;;  %v520_v52 = vmax.f32 %v505_v17, %v518_v49 }
 0x1f7   : > { %v550_v59 = vpop.permute.xlu1 %549 }
 0x1f8   : > { %v522_v54 = vmax.f32 %v1996_v2, %v520_v52  ;;  %534 = vrot.lane.b32.xlu0 %v521_v51, %s1756_s14 }
 0x1fa   : > { %536 = vrot.lane.b32.xlu1 %v522_v54, %s1756_s14 }
 0x1fc   : > { %547 = vrot.lane.b32.xlu0 %v522_v54, %s1755_s13 }
 0x1fe   : > { %545 = vrot.lane.b32.xlu1 %v521_v51, %s1755_s13 }
 0x200   : > { %532 = vrot.lane.b32.xlu0 %v1879_v3, %s1756_s14 }
 0x204   : > { %787 = vrot.lane.b32.xlu0 %v2140_v23, %s1756_s14 }
 0x26a   : > { %v535_v60 = vpop.permute.xlu0 %534 }
 0x26c   : > { %v537_v61 = vpop.permute.xlu1 %536 }
 0x26d   : > { %v539_v62 = vsel %vm324_vm14, %v535_v60, %v537_v61 }
 0x26e   : > { %v548_v63 = vpop.permute.xlu0 %547  ;;  %v543_v2 = vsel %vm1931_vm8, %v539_v62, -inf  ;;  %vm2188_vm8 = vcmp.ge.s32.totalorder %v240_v35, 1 }
 0x26f   : > { %v552_v1 = vsel %vm343_vm13, %v548_v63, %v550_v59 }
 0x270   : > { %v556_v5 = vsel %vm1913_vm1, %v552_v1, -inf  ;;  %v546_v6 = vpop.permute.xlu1 %545  ;;  %vm1766_vm1 = vmmov 0  }
 0x271   : > { %v558_v7 = vmax.f32 %v543_v2, %v556_v5  ;;  %v551_v9 = vsel %vm343_vm13, %v546_v6, %v548_v63  ;;  %vm243_vm13 = vcmp.ge.s32.totalorder %v2173_v36, 1  ;;  %v1392_v63 = vld [vmem:[%s2452_s3 + $0x10] sm:$0xff] }
 0x272   : > { %v533_v10 = vpop.permute.xlu0 %532  ;;  %v555_v12 = vsel %vm1918_vm3, %v551_v9, -inf  ;;  %vm2176_vm3 = vcmp.le.s32.totalorder %v240_v35, 6  ;;  %vm2238_vm4 = vmand %vm243_vm13, %vm2188_vm8 }
 0x273   : > { %v560_v3 = vmax.f32 %v522_v54, %v558_v7  ;;  %v538_v11 = vsel %vm324_vm14, %v533_v10, %v535_v60  ;;  %vm2184_vm7 = vmand %vm244_vm2, %vm2176_vm3 }
 0x274   : > { %v542_v13 = vsel %vm1937_vm9, %v538_v11, -inf  ;;  %vm2199_vm9 = vmand %vm244_vm2, %vm2188_vm8 }
 0x275   : > { %v557_v15 = vmax.f32 %v542_v13, %v555_v12  ;;  %v594_v28 = vpack.c.bf16 %v560_v3, %v560_v3  ;;  %vm2221_vm6 = vmand %vm243_vm13, %vm2176_vm3 }
 0x276   : > { %v788_v37 = vpop.permute.xlu0 %787 }
 0x277   : > { %v559_v16 = vmax.f32 %v521_v51, %v557_v15  ;;  %v596_v0 = vunpack.c.l.bf16 %v594_v28 }
 0x279   : > { %v593_v19 = vpack.c.bf16 %v559_v16, %v559_v16  ;;  %733 = vmatprep.mubr.f32.mxu0 %v596_v0  ;;  %v598_v18 = vsub.f32 %v560_v3, %v596_v0 }
 0x27b   : > { %663 = vmatprep.mubr.f32.mxu1 %v598_v18  ;;  %v595_v21 = vunpack.c.l.bf16 %v593_v19  ;;  %v1391_v19 = vld [vmem:[%s2451_s2 + $0x8] sm:$0xff] }
 0x27d   : > { %734 = vmatmul.mubr.f32.vlgmr.msra.gmra.mxu0 %v595_v21  ;;  %v597_v22 = vsub.f32 %v559_v16, %v595_v21 }
 0x27e   : > { %1587 = vmatprep.mubr.msk.f32.mxu0 %vm1766_vm1, %v1758_v4 }
 0x27f   : > { %664 = vmatmul.mubr.f32.vlgmr.msra.gmra.mxu1 %v597_v22 }
 0x280   : > { %1566 = vmatprep.mubr.msk.f32.mxu1 %vm1766_vm1, %v1758_v4 }
 0x33d   : > { %v1505_v20 = vpop.f32.mrf.mxu0 }
 0x33f   : > { %v1470_v29 = vpop.f32.mrf.mxu1  ;;  %v1506_v24 = vpop.f32.mrf.mxu0 }
 0x340   : > { %v1507_v26 = vadd.f32 %v1506_v24, %v1505_v20 }
 0x341   : > { %v1471_v25 = vpop.f32.mrf.mxu1 }
 0x342   : > { %v1472_v27 = vadd.f32 %v1471_v25, %v1470_v29 }
 0x344   : > { %v2144_v30 = vadd.f32 %v1507_v26, %v1472_v27  ;;  %v1412_v27 = vld [vmem:[%s2452_s3 + $0x18] sm:$0xff] }
 0x346   : > { %v746_v31 = vmax.f32 %v2144_v30, 0.0 }
 0x348   : > { %748 = vst.msk [vmem:[#allocation3 + $0x8] sm:$0xff] %vm747_vm0, %v746_v31 }
 0x34f   : > { %v750_v32 = vld [vmem:[#allocation3 + $0x8] sm:$0xff] }
 0x350   : > { %809 = vrot.lane.b32.xlu1 %v750_v32, %s1762_s17  ;;  %816 = vrot.lane.b32.xlu0 %v750_v32, %s1763_s23 }
 0x354   : > { %796 = vrot.lane.b32.xlu1 %v750_v32, %s1755_s13  ;;  %803 = vrot.lane.b32.xlu0 %v750_v32, %s1764_s25 }
 0x358   : > { %789 = vrot.lane.b32.xlu1 %v750_v32, %s1756_s14  ;;  %777 = vrot.lane.b32.xlu0 %v2140_v23, %s1765_s26 }
 0x35c   : > { %779 = vrot.lane.b32.xlu1 %v750_v32, %s1765_s26  ;;  %766 = vrot.lane.b32.xlu0 %v2140_v23, %s1767_s8 }
 0x360   : > { %768 = vrot.lane.b32.xlu1 %v750_v32, %s1767_s8  ;;  %756 = vrot.lane.b32.xlu0 %v2140_v23, %s1768_s30 }
 0x364   : > { %758 = vrot.lane.b32.xlu1 %v750_v32, %s1768_s30  ;;  %822 = vperm.xlu0 %1688, %v1390_v33  }
 0x368   : > { %925 = vrot.lane.b32.xlu1 %v2140_v23, %s1756_s14 }
 0x3c2   : > { %v810_v8 = vpop.permute.xlu1 %809  ;;  %v817_v41 = vpop.permute.xlu0 %816 }
 0x3c3   : > { %1549 = vmatpush3.msk.msra.mxu1 %vm2184_vm7, %v817_v41 }
 0x3c4   : > { %1550 = vmatprep.subr.mxu1 %v1758_v4 }
 0x3c5   : > { %1551 = vmatpush3.msk.msra.mxu1 %vm244_vm2, %v810_v8 }
 0x3c6   : > { %v797_v43 = vpop.permute.xlu1 %796  ;;  %1552 = vmatprep.subr.mxu1 %v1758_v4  ;;  %v804_v44 = vpop.permute.xlu0 %803 }
 0x3c7   : > { %1553 = vmatpush3.msk.msra.mxu1 %vm2199_vm9, %v804_v44 }
 0x3c8   : > { %1554 = vmatprep.subr.mxu1 %v1758_v4 }
 0x3c9   : > { %1555 = vmatpush3.msk.msra.mxu1 %vm2176_vm3, %v797_v43 }
 0x3ca   : > { %v790_v45 = vpop.permute.xlu1 %789  ;;  %1556 = vmatprep.subr.mxu1 %v1758_v4  ;;  %v778_v46 = vpop.permute.xlu0 %777 }
 0x3cb   : > { %v791_v47 = vsel %vm324_vm14, %v788_v37, %v790_v45  ;;  %1557 = vmatpush3.msra.mxu1 %v750_v32 }
 0x3cc   : > { %1558 = vmatprep.subr.mxu1 %v1758_v4 }
 0x3cd   : > { %1559 = vmatpush3.msk.msra.mxu1 %vm2188_vm8, %v791_v47 }
 0x3ce   : > { %v780_v17 = vpop.permute.xlu1 %779  ;;  %1560 = vmatprep.subr.mxu1 %v1758_v4  ;;  %v767_v49 = vpop.permute.xlu0 %766 }
 0x3cf   : > { %v782_v50 = vsel %vm781_vm15, %v778_v46, %v780_v17 }
 0x3d0   : > { %1561 = vmatpush3.msk.msra.mxu1 %vm2221_vm6, %v782_v50 }
 0x3d1   : > { %1562 = vmatprep.subr.mxu1 %v1758_v4 }
 0x3d2   : > { %v769_v51 = vpop.permute.xlu1 %768  ;;  %v757_v53 = vpop.permute.xlu0 %756 }
 0x3d3   : > { %v771_v52 = vsel %vm770_vm11, %v767_v49, %v769_v51  ;;  %v1411_v49 = vld [vmem:[%s2451_s2 + $0x10] sm:$0xff] }
 0x3d4   : > { %1563 = vmatpush3.msk.msra.mxu1 %vm243_vm13, %v771_v52 }
 0x3d5   : > { %1564 = vmatprep.subr.mxu1 %v1758_v4 }
 0x3d6   : > { %v759_v54 = vpop.permute.xlu1 %758 }
 0x3d7   : > { %v761_v56 = vsel %vm760_vm12, %v757_v53, %v759_v54 }
 0x3d8   : > { %1565 = vmatpush3.msk.msra.mxu1 %vm2238_vm4, %v761_v56 }
 0x3d9   : > { %1567 = vmatmul.mubr.msk.f32.vlgmr.msra.gmra.mxu1 %vm410_vm10, %v739_v55  ;;  %1590 = vmatprep.subr.mxu1 %v1758_v4 }
 0x3da   : > { %1608 = vmatprep.mubr.msk.f32.mxu1 %vm1766_vm1, %v1758_v4  ;;  %v926_v1 = vpop.permute.xlu1 %925 }
 0x3df   : > { %v823_v57 = vpop.permute.xlu0 %822 }
 0x499   : > { %v894_v58 = vpop.f32.mrf.mxu1 }
 0x49a   : > { %v895_v59 = vadd.f32 %v894_v58, %v823_v57  ;;  %v1414_v57 = vld [vmem:[%s2452_s3 + $0x20] sm:$0xff] }
 0x49b   : > { %v1568_v60 = vpop.f32.mrf.mxu1 }
 0x49c   : > { %v898_v61 = vmax.f32 %v895_v59, 0.0 }
 0x49e   : > { %899 = vst.msk [vmem:[#allocation3 + $0x8] sm:$0xff] %vm747_vm0, %v898_v61 }
 0x4a5   : > { %v901_v62 = vld [vmem:[#allocation3 + $0x8] sm:$0xff] }
 0x4a6   : > { %940 = vrot.lane.b32.xlu0 %v901_v62, %s1762_s17  ;;  %944 = vrot.lane.b32.xlu1 %v901_v62, %s1763_s23 }
 0x4aa   : > { %932 = vrot.lane.b32.xlu0 %v901_v62, %s1755_s13  ;;  %936 = vrot.lane.b32.xlu1 %v901_v62, %s1764_s25 }
 0x4ae   : > { %927 = vrot.lane.b32.xlu0 %v901_v62, %s1756_s14  ;;  %918 = vrot.lane.b32.xlu1 %v2140_v23, %s1765_s26 }
 0x4b2   : > { %920 = vrot.lane.b32.xlu0 %v901_v62, %s1765_s26  ;;  %911 = vrot.lane.b32.xlu1 %v2140_v23, %s1767_s8 }
 0x4b6   : > { %913 = vrot.lane.b32.xlu0 %v901_v62, %s1767_s8  ;;  %904 = vrot.lane.b32.xlu1 %v2140_v23, %s1768_s30 }
 0x4ba   : > { %906 = vrot.lane.b32.xlu0 %v901_v62, %s1768_s30  ;;  %950 = vperm.xlu1 %1689, %v1392_v63  }
 0x4be   : > { %1062 = vrot.lane.b32.xlu0 %v2140_v23, %s1756_s14 }
 0x518   : > { %v941_v2 = vpop.permute.xlu0 %940  ;;  %v945_v5 = vpop.permute.xlu1 %944 }
 0x519   : > { %1570 = vmatpush3.msk.msra.mxu0 %vm2184_vm7, %v945_v5 }
 0x51a   : > { %1571 = vmatprep.subr.mxu0 %v1758_v4 }
 0x51b   : > { %1572 = vmatpush3.msk.msra.mxu0 %vm244_vm2, %v941_v2 }
 0x51c   : > { %v933_v6 = vpop.permute.xlu0 %932  ;;  %1573 = vmatprep.subr.mxu0 %v1758_v4  ;;  %v937_v7 = vpop.permute.xlu1 %936 }
 0x51d   : > { %1574 = vmatpush3.msk.msra.mxu0 %vm2199_vm9, %v937_v7  ;;  %v1413_v7 = vld [vmem:[%s2451_s2 + $0x18] sm:$0xff] }
 0x51e   : > { %1575 = vmatprep.subr.mxu0 %v1758_v4 }
 0x51f   : > { %1576 = vmatpush3.msk.msra.mxu0 %vm2176_vm3, %v933_v6 }
 0x520   : > { %v928_v9 = vpop.permute.xlu0 %927  ;;  %1577 = vmatprep.subr.mxu0 %v1758_v4  ;;  %v919_v10 = vpop.permute.xlu1 %918 }
 0x521   : > { %v929_v3 = vsel %vm324_vm14, %v926_v1, %v928_v9  ;;  %1578 = vmatpush3.msra.mxu0 %v901_v62 }
 0x522   : > { %1579 = vmatprep.subr.mxu0 %v1758_v4 }
 0x523   : > { %1580 = vmatpush3.msk.msra.mxu0 %vm2188_vm8, %v929_v3 }
 0x524   : > { %v921_v11 = vpop.permute.xlu0 %920  ;;  %1581 = vmatprep.subr.mxu0 %v1758_v4  ;;  %v912_v12 = vpop.permute.xlu1 %911 }
 0x525   : > { %v922_v13 = vsel %vm781_vm15, %v919_v10, %v921_v11 }
 0x526   : > { %1582 = vmatpush3.msk.msra.mxu0 %vm2221_vm6, %v922_v13 }
 0x527   : > { %1583 = vmatprep.subr.mxu0 %v1758_v4 }
 0x528   : > { %v914_v15 = vpop.permute.xlu0 %913  ;;  %v905_v16 = vpop.permute.xlu1 %904 }
 0x529   : > { %v915_v28 = vsel %vm770_vm11, %v912_v12, %v914_v15 }
 0x52a   : > { %1584 = vmatpush3.msk.msra.mxu0 %vm243_vm13, %v915_v28 }
 0x52b   : > { %1585 = vmatprep.subr.mxu0 %v1758_v4 }
 0x52c   : > { %v907_v0 = vpop.permute.xlu0 %906 }
 0x52d   : > { %v908_v18 = vsel %vm760_vm12, %v905_v16, %v907_v0 }
 0x52e   : > { %1586 = vmatpush3.msk.msra.mxu0 %vm2238_vm4, %v908_v18 }
 0x52f   : > { %1588 = vmatmul.mubr.msk.f32.vlgmr.msra.gmra.mxu0 %vm410_vm10, %v1391_v19  ;;  %1611 = vmatprep.subr.mxu0 %v1758_v4 }
 0x530   : > { %1629 = vmatprep.mubr.msk.f32.mxu0 %vm1766_vm1, %v1758_v4 }
 0x535   : > { %v951_v21 = vpop.permute.xlu1 %950 }
 0x5ef   : > { %v1022_v22 = vpop.f32.mrf.mxu0 }
 0x5f0   : > { %v1023_v20 = vadd.f32 %v1022_v22, %v951_v21 }
 0x5f1   : > { %v1589_v29 = vpop.f32.mrf.mxu0 }
 0x5f2   : > { %v2308_v24 = vadd.f32 %v1023_v20, %v2144_v30  ;;  %v1063_v30 = vpop.permute.xlu0 %1062 }
 0x5f4   : > { %v1035_v25 = vmax.f32 %v2308_v24, 0.0 }
 0x5f6   : > { %1036 = vst.msk [vmem:[#allocation3 + $0x8] sm:$0xff] %vm747_vm0, %v1035_v25 }
 0x5fd   : > { %v1038_v26 = vld [vmem:[#allocation3 + $0x8] sm:$0xff] }
 0x5fe   : > { %1077 = vrot.lane.b32.xlu1 %v1038_v26, %s1762_s17  ;;  %1081 = vrot.lane.b32.xlu0 %v1038_v26, %s1763_s23 }
 0x602   : > { %1069 = vrot.lane.b32.xlu1 %v1038_v26, %s1755_s13  ;;  %1073 = vrot.lane.b32.xlu0 %v1038_v26, %s1764_s25 }
 0x606   : > { %1064 = vrot.lane.b32.xlu1 %v1038_v26, %s1756_s14  ;;  %1055 = vrot.lane.b32.xlu0 %v2140_v23, %s1765_s26 }
 0x60a   : > { %1057 = vrot.lane.b32.xlu1 %v1038_v26, %s1765_s26  ;;  %1048 = vrot.lane.b32.xlu0 %v2140_v23, %s1767_s8 }
 0x60e   : > { %1050 = vrot.lane.b32.xlu1 %v1038_v26, %s1767_s8  ;;  %1041 = vrot.lane.b32.xlu0 %v2140_v23, %s1768_s30 }
 0x612   : > { %1043 = vrot.lane.b32.xlu1 %v1038_v26, %s1768_s30  ;;  %1087 = vperm.xlu0 %1688, %v1412_v27  }
 0x616   : > { %1190 = vrot.lane.b32.xlu1 %v2140_v23, %s1756_s14 }
 0x670   : > { %v1078_v31 = vpop.permute.xlu1 %1077  ;;  %v1082_v32 = vpop.permute.xlu0 %1081 }
 0x671   : > { %1591 = vmatpush3.msk.msra.mxu1 %vm2184_vm7, %v1082_v32 }
 0x672   : > { %1592 = vmatprep.subr.mxu1 %v1758_v4 }
 0x673   : > { %1593 = vmatpush3.msk.msra.mxu1 %vm244_vm2, %v1078_v31 }
 0x674   : > { %v1070_v33 = vpop.permute.xlu1 %1069  ;;  %1594 = vmatprep.subr.mxu1 %v1758_v4  ;;  %v1074_v34 = vpop.permute.xlu0 %1073 }
 0x675   : > { %1595 = vmatpush3.msk.msra.mxu1 %vm2199_vm9, %v1074_v34 }
 0x676   : > { %1596 = vmatprep.subr.mxu1 %v1758_v4 }
 0x677   : > { %1597 = vmatpush3.msk.msra.mxu1 %vm2176_vm3, %v1070_v33 }
 0x678   : > { %v1065_v35 = vpop.permute.xlu1 %1064  ;;  %1598 = vmatprep.subr.mxu1 %v1758_v4  ;;  %v1056_v37 = vpop.permute.xlu0 %1055 }
 0x679   : > { %v1066_v8 = vsel %vm324_vm14, %v1063_v30, %v1065_v35  ;;  %1599 = vmatpush3.msra.mxu1 %v1038_v26 }
 0x67a   : > { %1600 = vmatprep.subr.mxu1 %v1758_v4 }
 0x67b   : > { %1601 = vmatpush3.msk.msra.mxu1 %vm2188_vm8, %v1066_v8 }
 0x67c   : > { %v1058_v41 = vpop.permute.xlu1 %1057  ;;  %1602 = vmatprep.subr.mxu1 %v1758_v4  ;;  %v1049_v43 = vpop.permute.xlu0 %1048 }
 0x67d   : > { %v1059_v44 = vsel %vm781_vm15, %v1056_v37, %v1058_v41 }
 0x67e   : > { %1603 = vmatpush3.msk.msra.mxu1 %vm2221_vm6, %v1059_v44 }
 0x67f   : > { %1604 = vmatprep.subr.mxu1 %v1758_v4 }
 0x680   : > { %v1051_v45 = vpop.permute.xlu1 %1050  ;;  %v1042_v47 = vpop.permute.xlu0 %1041 }
 0x681   : > { %v1052_v46 = vsel %vm770_vm11, %v1049_v43, %v1051_v45 }
 0x682   : > { %1605 = vmatpush3.msk.msra.mxu1 %vm243_vm13, %v1052_v46 }
 0x683   : > { %1606 = vmatprep.subr.mxu1 %v1758_v4 }
 0x684   : > { %v1044_v17 = vpop.permute.xlu1 %1043 }
 0x685   : > { %v1045_v50 = vsel %vm760_vm12, %v1042_v47, %v1044_v17 }
 0x686   : > { %1607 = vmatpush3.msk.msra.mxu1 %vm2238_vm4, %v1045_v50 }
 0x687   : > { %1609 = vmatmul.mubr.msk.f32.vlgmr.msra.gmra.mxu1 %vm410_vm10, %v1411_v49 }
 0x688   : > { %v1191_v58 = vpop.permute.xlu1 %1190 }
 0x68d   : > { %v1088_v51 = vpop.permute.xlu0 %1087 }
 0x747   : > { %v1159_v52 = vpop.f32.mrf.mxu1 }
 0x748   : > { %v1160_v53 = vadd.f32 %v1159_v52, %v1088_v51 }
 0x749   : > { %v1610_v54 = vpop.f32.mrf.mxu1 }
 0x74a   : > { %v1163_v55 = vmax.f32 %v1160_v53, 0.0 }
 0x74c   : > { %1164 = vst.msk [vmem:[#allocation3 + $0x8] sm:$0xff] %vm747_vm0, %v1163_v55 }
 0x753   : > { %v1166_v56 = vld [vmem:[#allocation3 + $0x8] sm:$0xff] }
 0x754   : > { %1205 = vrot.lane.b32.xlu0 %v1166_v56, %s1762_s17  ;;  %1209 = vrot.lane.b32.xlu1 %v1166_v56, %s1763_s23 }
 0x758   : > { %1197 = vrot.lane.b32.xlu0 %v1166_v56, %s1755_s13  ;;  %1201 = vrot.lane.b32.xlu1 %v1166_v56, %s1764_s25  ;;  %s215_s25 = sand.u32 1, %s1742_s19  }
 0x759   : > { %s1294_s6 = scalar_lea.sflag [#allocation5], %s215_s25 }
 0x75c   : > { %1192 = vrot.lane.b32.xlu0 %v1166_v56, %s1756_s14  ;;  %1183 = vrot.lane.b32.xlu1 %v2140_v23, %s1765_s26 }
 0x760   : > { %1185 = vrot.lane.b32.xlu0 %v1166_v56, %s1765_s26  ;;  %1176 = vrot.lane.b32.xlu1 %v2140_v23, %s1767_s8  ;;  %s1370_s26 = sshll.u32 %s215_s25, 3 }
 0x764   : > { %1178 = vrot.lane.b32.xlu0 %v1166_v56, %s1767_s8  ;;  %1169 = vrot.lane.b32.xlu1 %v2140_v23, %s1768_s30  ;;  %s1434_s8 = sshll.u32 %s1821_s22, 7  ;;  %s1769_s22 = smov [#allocation4]  }
 0x765   : > { %s1305_s16 = scalar_lea.hbm %s2454_s5, %s1434_s8  ;;  %s1694_s9 = sshll.u32 %s1769_s22, 4  ;;  %s1695_s9 = int_to_ptr.vmem [resolvable:$false] %s1694_s9 }
 0x766   : > { %s1696_s10 = scalar_lea.vmem %s1695_s9, 256 }
 0x768   : > { %1171 = vrot.lane.b32.xlu0 %v1166_v56, %s1768_s30  ;;  %1215 = vperm.xlu1 %1689, %v1414_v57   ;;  %s217_s30 = scalar_lea.vmem [#allocation4], %s1370_s26 }
 0x769   : > { %s1307_s11 = sshll.u32 %s217_s30, 4  ;;  %s1308_s11 = int_to_ptr.vmem [resolvable:$true] %s1307_s11 }
 0x76a   : > { %s1690_s7 = scalar_lea.vmem %s1308_s11, 128  ;;  %p1697_p0 = scmp.lt.s32.totalorder %s1308_s11, %s1695_s9 }
 0x76b   : > { %p1691_p11 = scmp.ne.s32.totalorder %s1308_s11, %s1690_s7  ;;  %p1698_p1 = scmp.lt.s32.totalorder %s1696_s10, %s1690_s7 }
 0x76d   : > { %p1692_p12 = pnand %p1691_p11, %p1838_p5  ;;  %p1699_p2 = por %p1698_p1, %p1697_p0 }
 0x76f   : > { %p1693_p13 = pneg %p1692_p12 }
 0x771   : > { %p1700_p3 = pnand %p1699_p2, %p1693_p13 }
 0x7c6   : > { %v1206_v59 = vpop.permute.xlu0 %1205  ;;  %v1210_v60 = vpop.permute.xlu1 %1209 }
 0x7c7   : > { %1612 = vmatpush3.msk.msra.mxu0 %vm2184_vm7, %v1210_v60 }
 0x7c8   : > { %1613 = vmatprep.subr.mxu0 %v1758_v4 }
 0x7c9   : > { %1614 = vmatpush3.msk.msra.mxu0 %vm244_vm2, %v1206_v59 }
 0x7ca   : > { %v1198_v61 = vpop.permute.xlu0 %1197  ;;  %1615 = vmatprep.subr.mxu0 %v1758_v4  ;;  %v1202_v23 = vpop.permute.xlu1 %1201 }
 0x7cb   : > { %1616 = vmatpush3.msk.msra.mxu0 %vm2199_vm9, %v1202_v23 }
 0x7cc   : > { %1617 = vmatprep.subr.mxu0 %v1758_v4 }
 0x7cd   : > { %1618 = vmatpush3.msk.msra.mxu0 %vm2176_vm3, %v1198_v61 }
 0x7ce   : > { %v1193_v62 = vpop.permute.xlu0 %1192  ;;  %1619 = vmatprep.subr.mxu0 %v1758_v4  ;;  %v1184_v39 = vpop.permute.xlu1 %1183 }
 0x7cf   : > { %v1194_v63 = vsel %vm324_vm14, %v1191_v58, %v1193_v62  ;;  %1620 = vmatpush3.msra.mxu0 %v1166_v56 }
 0x7d0   : > { %1621 = vmatprep.subr.mxu0 %v1758_v4 }
 0x7d1   : > { %1622 = vmatpush3.msk.msra.mxu0 %vm2188_vm8, %v1194_v63 }
 0x7d2   : > { %v1186_v1 = vpop.permute.xlu0 %1185  ;;  %1623 = vmatprep.subr.mxu0 %v1758_v4  ;;  %v1177_v42 = vpop.permute.xlu1 %1176 }
 0x7d3   : > { %v1187_v38 = vsel %vm781_vm15, %v1184_v39, %v1186_v1 }
 0x7d4   : > { %1624 = vmatpush3.msk.msra.mxu0 %vm2221_vm6, %v1187_v38 }
 0x7d5   : > { %1625 = vmatprep.subr.mxu0 %v1758_v4 }
 0x7d6   : > { %v1179_v2 = vpop.permute.xlu0 %1178  ;;  %v1170_v40 = vpop.permute.xlu1 %1169 }
 0x7d7   : > { %v1180_v5 = vsel %vm770_vm11, %v1177_v42, %v1179_v2 }
 0x7d8   : > { %1626 = vmatpush3.msk.msra.mxu0 %vm243_vm13, %v1180_v5 }
 0x7d9   : > { %1627 = vmatprep.subr.mxu0 %v1758_v4 }
 0x7da   : > { %v1172_v6 = vpop.permute.xlu0 %1171 }
 0x7db   : > { %v1173_v48 = vsel %vm760_vm12, %v1170_v40, %v1172_v6 }
 0x7dc   : > { %1628 = vmatpush3.msk.msra.mxu0 %vm2238_vm4, %v1173_v48 }
 0x7dd   : > { %1630 = vmatmul.mubr.msk.f32.vlgmr.msra.gmra.mxu0 %vm410_vm10, %v1413_v7 }
 0x7e3   : > { %v1216_v36 = vpop.permute.xlu1 %1215 }
 0x89d   : > { %v1287_v9 = vpop.f32.mrf.mxu0 }
 0x89e   : > { %v1288_v4 = vadd.f32 %v1287_v9, %v1216_v36 }
 0x89f   : > { %v1631_v10 = vpop.f32.mrf.mxu0 }
 0x8a0   : > { %v1291_v3 = vadd.f32 %v1288_v4, %v2308_v24 }
 0x8a2   : > { %1292 = vst.msk [vmem:[%s217_s30] sm:$0xff] %vm747_vm0, %v1291_v3 }
 0x8a3   : > { %1703 = shalt.err (!%p1700_p3)
}
 0x8a4   : > { %s1704_s17 = scalar_lea.hbm %s1305_s16, 128  ;;  %s1708_s14 = scalar_lea.hbm %s2454_s5, 256 }
 0x8a5   : > { %p1705_p4 = scmp.ne.s32.totalorder %s1305_s16, %s1704_s17  ;;  %p1709_p9 = scmp.lt.s32.totalorder %s1305_s16, %s2454_s5 }
 0x8a6   : > { %p1710_p10 = scmp.lt.s32.totalorder %s1708_s14, %s1704_s17 }
 0x8a7   : > { %p1706_p7 = pnand %p1705_p4, %p1838_p5 }
 0x8a8   : > { %p1711_p11 = por %p1710_p10, %p1709_p9 }
 0x8a9   : > { %p1707_p8 = pneg %p1706_p7 }
 0x8ab   : > { %p1712_p12 = pnand %p1711_p11, %p1707_p8 }
 0x8ad   : > { %1715 = shalt.err (!%p1712_p12)
}
 0x8ae   : > { %1632 = dma.vmem_to_hbm [thread:$0]  (%p1838_p5), %s1308_s11, 128, %s1305_s16, %s1294_s6  }
 0x8af PF: > { %p1638_p13 = scmp.ge.s32.totalorder %s1750_s21, 2  ;;  %s1319_s8 = sand.u32 1, %s1738_s18  }
 0x8b0   : > { %s1320_s30 = scalar_lea.sflag [#allocation5], %s1319_s8 }
 0x8b1   : > { %p1635_p0 = pnand %p1638_p13, %p1842_p6 }
 0x8b3   : > { %p1636_p1 = pneg %p1635_p0 }
 0x8b5   : > { %1733 = dma.done.wait (%p1636_p1), %s1320_s30, 128  }
 0x8b6   : > { %1735 = vsyncadd (%p1636_p1), %s1320_s30, 4294967168  ;;  %p15_p2 = scmp.ge.s32.totalorder %s1825_s24, 4   ;;  %s2477_s18 = smov %s1742_s19 }
 0x8b7   : > { %s2478_s19 = smov %s1746_s20  ;;  %s2479_s20 = smov %s1836_s27 }
 0x8b8   : > { %s2480_s21 = smov %s1825_s24  ;;  %17 = sbr.rel (!%p15_p2) target bundleno = 3 (0x3), region = 82 }
 0x8bd   :  { %1325 = vsyncpa [#allocation5], 1 }
 0x8be   :  { %1327 = vsyncpa [#allocation5 + $0x1], 1 }

</bundles_post_ra>
